<compile_context>
chip_gen: v7x
topology: tpu7x:2x2x1
jax: 0.10.0
libtpu: 0.0.40
codegen_flags: <defaults>
</compile_context>

<pallas_src>
import jax
import jax.numpy as jnp
from jax.experimental import pallas as pl
from jax.experimental.pallas import tpu as pltpu


# ----------------------------------------------------------------------------
# Helpers.
# ----------------------------------------------------------------------------
def _lane_tile(n, target=512):
    """Largest multiple of 128 dividing n and <= target; fall back to full n."""
    best = None
    t = 128
    while t <= min(n, target):
        if n % t == 0:
            best = t
        t += 128
    return best if best is not None else n


def _vmem_budget_bytes():
    """Generation-aware scoped-VMEM cap: ~5/8 of physical per-core VMEM,
    clamped to <= 48 MiB (=> ~40 MiB on v7x's 64 MiB/TC, 48 MiB on v5e/v6e)."""
    cap = 64 * 2**20  # conservative fallback = v7x per-TC capacity
    try:
        cap = int(pltpu.get_tpu_info().vmem_capacity_bytes)
    except Exception:
        pass
    return int(min(48 * 2**20, cap * 5 // 8))


def _vmem_limit_bytes(*block_byte_counts):
    """Explicit scoped-VMEM budget: 2x double-buffered blocks, 2x headroom,
    clamped to [8 MiB, generation-aware cap]."""
    need = 4 * int(sum(block_byte_counts))
    return int(min(_vmem_budget_bytes(), max(8 * 2**20, need)))


# ----------------------------------------------------------------------------
# Kernel 1: conv3x3 (pad=1, stride=1) via 9 shifted in-kernel matmuls (no
#           materialized im2col), fused with bias + ReLU + channel-L2 epilogue.
# ----------------------------------------------------------------------------
def conv3x3_relu_l2norm(x, w, b):
    """x: (B, Cin, H, W); w: (Cout, Cin, 3, 3); b: (Cout,).
    Returns channel-L2-normalized ReLU(conv) features, (B, Cout, H*W) bf16."""
    B, Cin, H, W = x.shape
    Cout = w.shape[0]
    Wp = W + 2                      # padded row width
    n_out = H * Wp                  # output computed on padded-row layout, cropped after
    n_pad = n_out + 2 * Wp + 2      # so every tap window [off, off+n_out) stays in-bounds

    # Pad spatially, flatten, bf16 operands (f32 accumulation in-kernel).
    xp = jnp.pad(x.astype(jnp.bfloat16), ((0, 0), (0, 0), (1, 1), (1, 1)))   # (B,Cin,H+2,Wp)
    xflat = xp.reshape(B, Cin, (H + 2) * Wp)
    xflat = jnp.pad(xflat, ((0, 0), (0, 0), (0, n_pad - (H + 2) * Wp)))      # (B,Cin,n_pad)
    wt = jnp.transpose(w, (2, 3, 0, 1)).reshape(9, Cout, Cin).astype(jnp.bfloat16)
    bf = b.reshape(Cout, 1).astype(jnp.float32)

    def kernel(x_ref, w_ref, b_ref, o_ref):
        # x_ref: (1, Cin, n_pad) bf16 flattened padded image
        # w_ref: (9, Cout, Cin)  bf16 per-tap weights      (grid-constant)
        # b_ref: (Cout, 1)       f32 bias                  (grid-constant)
        # o_ref: (1, Cout, n_out) bf16 normalized features (padded-row layout)
        acc = jnp.zeros((Cout, n_out), jnp.float32)
        for dy in range(3):                         # unrolled: 9 shifted MXU matmuls
            for dx in range(3):
                off = dy * Wp + dx                  # constant-offset window in flat space
                win = x_ref[0, :, off:off + n_out]                           # (Cin, n_out)
                acc = acc + jnp.dot(w_ref[dy * 3 + dx], win,
                                    preferred_element_type=jnp.float32)      # MXU, f32 acc
        acc = jnp.maximum(acc + b_ref[...], 0.0)                             # bias + ReLU
        # L2 normalize over channels (hoisted out of the head; once per position).
        inv = jax.lax.rsqrt(jnp.sum(acc * acc, axis=0, keepdims=True) + 1e-12)
        o_ref[0] = (acc * inv).astype(o_ref.dtype)

    blk_bytes = (Cin * n_pad * 2, 9 * Cout * Cin * 2, Cout * 4, Cout * n_out * 2)
    # TODO(synk): weight/bias specs are grid-constant; single-buffer them via
    #             pipeline_mode=pl.Buffered(1) once verified on the target jax version.
    # TODO(synk): at realistic C/Cout/H*W, tile the spatial axis into halo'd row
    #             blocks and tile K (keep Cout untiled so the fused channel-L2
    #             normalization stays correct, or move it to a second pass).
    out = pl.pallas_call(
        kernel,
        out_shape=jax.ShapeDtypeStruct((B, Cout, n_out), jnp.bfloat16),
        grid=(B,),
        in_specs=[
            pl.BlockSpec((1, Cin, n_pad), lambda i: (i, 0, 0)),
            pl.BlockSpec((9, Cout, Cin), lambda i: (0, 0, 0)),
            pl.BlockSpec((Cout, 1), lambda i: (0, 0)),
        ],
        out_specs=pl.BlockSpec((1, Cout, n_out), lambda i: (i, 0, 0)),
        compiler_params=pltpu.CompilerParams(
            dimension_semantics=("parallel",),
            vmem_limit_bytes=_vmem_limit_bytes(*blk_bytes)),
    )(xflat, wt, bf)

    # Crop the padded-row layout back to (B, Cout, H*W).
    out = out.reshape(B, Cout, H, Wp)[:, :, :, :W].reshape(B, Cout, H * W)
    return out


# ----------------------------------------------------------------------------
# Kernel 2: OS2D head — regressors folded into the class templates; one
#           (13*L, C) x (C, tn) MXU matmul per (image, spatial-tile).
# ----------------------------------------------------------------------------
def _os2d_head_kernel(f_ref, m_ref, o_ref):
    # f_ref: (1, C, tn)   bf16 normalized image-feature lane tile
    # m_ref: (13*L, C)    bf16 folded [class-mean; loc 4; corners 8] x L regressors
    # o_ref: (1, 13*L, tn) f32 head output (single lane-dense store)
    o_ref[0] = jnp.dot(m_ref[...], f_ref[0], preferred_element_type=jnp.float32)


def os2d_head(feats, class_feats, w_loc, w_cor):
    """feats: (B, C, Nf) bf16 normalized; class_feats: (L, C, P) bf16 normalized;
    w_loc: (4, P); w_cor: (8, P). Returns loc (B,L,4,Nf), cls (B,L,Nf), cor (B,L,8,Nf)."""
    B, C, Nf = feats.shape
    L, _, P = class_feats.shape

    # Fused regressor: row 0 = mean pooling (class score), rows 1..4 = loc, 5..12 = corners.
    w_all = jnp.concatenate([
        jnp.full((1, P), 1.0 / P, jnp.float32),
        w_loc.astype(jnp.float32),
        w_cor.astype(jnp.float32),
    ], axis=0)                                                               # (13, P)
    # Fold regressors into the normalized templates (exact: head is linear in the
    # correlation map), stacking all labels so features are read once per tile.
    m = jnp.einsum('rp,lcp->lrc', w_all, class_feats.astype(jnp.float32))    # (L, 13, C)
    R = 13 * L
    m = m.reshape(R, C).astype(jnp.bfloat16)

    # Lane tile sized against the generation-aware VMEM budget.
    budget = _vmem_budget_bytes()
    per_lane_bytes = C * 2 + R * 4         # f tile (bf16) + out tile (f32)
    fixed_bytes = R * C * 2                # folded regressors (bf16)
    target = max(128, min(2048, (budget // 4 - fixed_bytes) // per_lane_bytes))
    tn = _lane_tile(Nf, target=target)
    nt = Nf // tn

    blk_bytes = (C * tn * 2, R * C * 2, R * tn * 4)
    # TODO(synk): the folded-regressor spec is grid-constant -> pl.Buffered(1)
    #             candidate; loc/corner rows could also be written bf16 to halve
    #             head writeback on v5e/v6e.
    out = pl.pallas_call(
        _os2d_head_kernel,
        out_shape=jax.ShapeDtypeStruct((B, R, Nf), jnp.float32),
        grid=(B, nt),
        in_specs=[
            pl.BlockSpec((1, C, tn), lambda b, t: (b, 0, t)),
            pl.BlockSpec((R, C), lambda b, t: (0, 0)),
        ],
        out_specs=pl.BlockSpec((1, R, tn), lambda b, t: (b, 0, t)),
        compiler_params=pltpu.CompilerParams(
            dimension_semantics=("parallel", "parallel"),
            vmem_limit_bytes=_vmem_limit_bytes(*blk_bytes)),
    )(feats, m)

    out = out.reshape(B, L, 13, Nf)
    cls = out[:, :, 0, :]          # (B, L, Nf)
    loc = out[:, :, 1:5, :]        # (B, L, 4, Nf)
    cor = out[:, :, 5:13, :]       # (B, L, 8, Nf)
    return loc, cls, cor


# ----------------------------------------------------------------------------
# Os2dModel-equivalent forward (evaluation/training path without grad toggles).
# ----------------------------------------------------------------------------
def os2d_forward(images, class_images, params):
    """Mirrors Os2dModel.forward(images, class_images, train_mode=False).

    Returns:
      loc_scores                     : (B, num_labels, 4, num_anchors)
      class_scores                   : (B, num_labels, num_anchors)
      class_scores_transform_detached: same as class_scores, gradients stopped
      fm_size                        : (fmH, fmW), num_anchors == fmH * fmW
      transform_corners              : (B, num_labels, 8, num_anchors)
    """
    B, _, H, W = images.shape
    # backbone on input images (conv+ReLU, L2-normalization fused in epilogue)
    feats = conv3x3_relu_l2norm(images, params["w_feat"], params["b_feat"])          # (B, C, H*W)
    # LabelFeatureExtractor: separate-weight backbone on class images
    # TODO(synk): original accepts a list of differently-sized class images; here
    #             they are batched at one common size.
    class_feats = conv3x3_relu_l2norm(class_images, params["w_label"], params["b_label"])  # (L, C, h*w)
    # Os2dHead applied to the feature maps
    loc, cls, cor = os2d_head(feats, class_feats, params["w_loc"], params["w_cor"])
    cls_detached = jax.lax.stop_gradient(cls)
    fm_size = (H, W)  # stride-1 pad-1 conv keeps spatial size
    return loc, cls, cls_detached, fm_size, cor


def init_params(key, cin=3, cout=32, class_hw=8):
    ks = jax.random.split(key, 6)
    p = {
        "w_feat": 0.1 * jax.random.normal(ks[0], (cout, cin, 3, 3), jnp.float32),
        "b_feat": 0.01 * jax.random.normal(ks[1], (cout,), jnp.float32),
        "w_label": 0.1 * jax.random.normal(ks[2], (cout, cin, 3, 3), jnp.float32),
        "b_label": 0.01 * jax.random.normal(ks[3], (cout,), jnp.float32),
        "w_loc": 0.05 * jax.random.normal(ks[4], (4, class_hw * class_hw), jnp.float32),
        "w_cor": 0.05 * jax.random.normal(ks[5], (8, class_hw * class_hw), jnp.float32),
    }
    return p


if __name__ == "__main__":
    key = jax.random.PRNGKey(0)
    k_img, k_cls, k_par = jax.random.split(key, 3)

    B, Cin, H, W = 2, 3, 16, 16       # input images (NCHW)
    L, ch, cw = 3, 8, 8               # class images (num_labels x 3 x 8 x 8)
    Cfeat = 32

    images = jax.random.normal(k_img, (B, Cin, H, W), jnp.float32)
    class_images = jax.random.normal(k_cls, (L, Cin, ch, cw), jnp.float32)
    params = init_params(k_par, cin=Cin, cout=Cfeat, class_hw=ch)

    loc, cls, cls_det, fm_size, corners = jax.jit(os2d_forward)(images, class_images, params)
    jax.block_until_ready((loc, cls, cls_det, corners))

    num_anchors = fm_size[0] * fm_size[1]
    assert loc.shape == (B, L, 4, num_anchors)
    assert cls.shape == (B, L, num_anchors)
    assert cls_det.shape == (B, L, num_anchors)
    assert corners.shape == (B, L, 8, num_anchors)
    assert bool(jnp.all(jnp.isfinite(loc))) and bool(jnp.all(jnp.isfinite(cls)))
    assert bool(jnp.all(jnp.isfinite(corners)))

    print("KERNEL_OK")
</pallas_src>

<mosaic_0001>
module attributes {stable_mosaic.version = 11 : i64} {
  func.func @kernel(%arg0: i32, %arg1: memref<1x3x326xbf16, #tpu.memory_space<vmem>>, %arg2: memref<9x32x3xbf16, #tpu.memory_space<vmem>>, %arg3: memref<32x1xf32, #tpu.memory_space<vmem>>, %arg4: memref<1x32x288xbf16, #tpu.memory_space<vmem>>) attributes {dimension_semantics = [#tpu.dimension_semantics<parallel>], iteration_bounds = array<i64: 2>, scalar_prefetch = 0 : i64, scratch_operands = 0 : i64, tpu.core_type = #tpu.core_type<tc>, window_params = [{transform_indices = @transform_0, window_bounds = array<i64: 1, 3, 326>}, {pipeline_mode = #tpu.pipeline_mode<synchronous>, transform_indices = @transform_1, window_bounds = array<i64: 9, 32, 3>}, {pipeline_mode = #tpu.pipeline_mode<synchronous>, transform_indices = @transform_2, window_bounds = array<i64: 32, 1>}, {transform_indices = @transform_3, window_bounds = array<i64: 1, 32, 288>}]} {
    %cst = arith.constant 0.000000e+00 : f32
    %0 = vector.broadcast %cst : f32 to vector<32x288xf32>
    %c0 = arith.constant 0 : index
    %c0_0 = arith.constant 0 : index
    %c0_1 = arith.constant 0 : index
    %1 = vector.load %arg1[%c0, %c0_0, %c0_1] : memref<1x3x326xbf16, #tpu.memory_space<vmem>>, vector<1x3x288xbf16>
    %2 = vector.shape_cast %1 : vector<1x3x288xbf16> to vector<3x288xbf16>
    %c0_2 = arith.constant 0 : index
    %c0_3 = arith.constant 0 : index
    %c0_4 = arith.constant 0 : index
    %3 = vector.load %arg2[%c0_2, %c0_3, %c0_4] : memref<9x32x3xbf16, #tpu.memory_space<vmem>>, vector<1x32x3xbf16>
    %4 = vector.shape_cast %3 : vector<1x32x3xbf16> to vector<32x3xbf16>
    %cst_5 = arith.constant dense<0.000000e+00> : vector<32x288xf32>
    %5 = tpu.matmul %4, %2, %cst_5 {dimension_numbers = #tpu.dot_dimension_numbers<[1], [0], [0], [1], [0, 0, 1, 1], [], []>} : vector<32x3xbf16>, vector<3x288xbf16>, vector<32x288xf32> -> vector<32x288xf32>
    %6 = arith.addf %0, %5 : vector<32x288xf32>
    %c0_6 = arith.constant 0 : index
    %c0_7 = arith.constant 0 : index
    %c1 = arith.constant 1 : index
    %7 = vector.load %arg1[%c0_6, %c0_7, %c1] : memref<1x3x326xbf16, #tpu.memory_space<vmem>>, vector<1x3x288xbf16>
    %8 = vector.shape_cast %7 : vector<1x3x288xbf16> to vector<3x288xbf16>
    %c1_8 = arith.constant 1 : index
    %c0_9 = arith.constant 0 : index
    %c0_10 = arith.constant 0 : index
    %9 = vector.load %arg2[%c1_8, %c0_9, %c0_10] : memref<9x32x3xbf16, #tpu.memory_space<vmem>>, vector<1x32x3xbf16>
    %10 = vector.shape_cast %9 : vector<1x32x3xbf16> to vector<32x3xbf16>
    %cst_11 = arith.constant dense<0.000000e+00> : vector<32x288xf32>
    %11 = tpu.matmul %10, %8, %cst_11 {dimension_numbers = #tpu.dot_dimension_numbers<[1], [0], [0], [1], [0, 0, 1, 1], [], []>} : vector<32x3xbf16>, vector<3x288xbf16>, vector<32x288xf32> -> vector<32x288xf32>
    %12 = arith.addf %6, %11 : vector<32x288xf32>
    %c0_12 = arith.constant 0 : index
    %c0_13 = arith.constant 0 : index
    %c2 = arith.constant 2 : index
    %13 = vector.load %arg1[%c0_12, %c0_13, %c2] : memref<1x3x326xbf16, #tpu.memory_space<vmem>>, vector<1x3x288xbf16>
    %14 = vector.shape_cast %13 : vector<1x3x288xbf16> to vector<3x288xbf16>
    %c2_14 = arith.constant 2 : index
    %c0_15 = arith.constant 0 : index
    %c0_16 = arith.constant 0 : index
    %15 = vector.load %arg2[%c2_14, %c0_15, %c0_16] : memref<9x32x3xbf16, #tpu.memory_space<vmem>>, vector<1x32x3xbf16>
    %16 = vector.shape_cast %15 : vector<1x32x3xbf16> to vector<32x3xbf16>
    %cst_17 = arith.constant dense<0.000000e+00> : vector<32x288xf32>
    %17 = tpu.matmul %16, %14, %cst_17 {dimension_numbers = #tpu.dot_dimension_numbers<[1], [0], [0], [1], [0, 0, 1, 1], [], []>} : vector<32x3xbf16>, vector<3x288xbf16>, vector<32x288xf32> -> vector<32x288xf32>
    %18 = arith.addf %12, %17 : vector<32x288xf32>
    %c0_18 = arith.constant 0 : index
    %c0_19 = arith.constant 0 : index
    %c18 = arith.constant 18 : index
    %19 = vector.load %arg1[%c0_18, %c0_19, %c18] : memref<1x3x326xbf16, #tpu.memory_space<vmem>>, vector<1x3x288xbf16>
    %20 = vector.shape_cast %19 : vector<1x3x288xbf16> to vector<3x288xbf16>
    %c3 = arith.constant 3 : index
    %c0_20 = arith.constant 0 : index
    %c0_21 = arith.constant 0 : index
    %21 = vector.load %arg2[%c3, %c0_20, %c0_21] : memref<9x32x3xbf16, #tpu.memory_space<vmem>>, vector<1x32x3xbf16>
    %22 = vector.shape_cast %21 : vector<1x32x3xbf16> to vector<32x3xbf16>
    %cst_22 = arith.constant dense<0.000000e+00> : vector<32x288xf32>
    %23 = tpu.matmul %22, %20, %cst_22 {dimension_numbers = #tpu.dot_dimension_numbers<[1], [0], [0], [1], [0, 0, 1, 1], [], []>} : vector<32x3xbf16>, vector<3x288xbf16>, vector<32x288xf32> -> vector<32x288xf32>
    %24 = arith.addf %18, %23 : vector<32x288xf32>
    %c0_23 = arith.constant 0 : index
    %c0_24 = arith.constant 0 : index
    %c19 = arith.constant 19 : index
    %25 = vector.load %arg1[%c0_23, %c0_24, %c19] : memref<1x3x326xbf16, #tpu.memory_space<vmem>>, vector<1x3x288xbf16>
    %26 = vector.shape_cast %25 : vector<1x3x288xbf16> to vector<3x288xbf16>
    %c4 = arith.constant 4 : index
    %c0_25 = arith.constant 0 : index
    %c0_26 = arith.constant 0 : index
    %27 = vector.load %arg2[%c4, %c0_25, %c0_26] : memref<9x32x3xbf16, #tpu.memory_space<vmem>>, vector<1x32x3xbf16>
    %28 = vector.shape_cast %27 : vector<1x32x3xbf16> to vector<32x3xbf16>
    %cst_27 = arith.constant dense<0.000000e+00> : vector<32x288xf32>
    %29 = tpu.matmul %28, %26, %cst_27 {dimension_numbers = #tpu.dot_dimension_numbers<[1], [0], [0], [1], [0, 0, 1, 1], [], []>} : vector<32x3xbf16>, vector<3x288xbf16>, vector<32x288xf32> -> vector<32x288xf32>
    %30 = arith.addf %24, %29 : vector<32x288xf32>
    %c0_28 = arith.constant 0 : index
    %c0_29 = arith.constant 0 : index
    %c20 = arith.constant 20 : index
    %31 = vector.load %arg1[%c0_28, %c0_29, %c20] : memref<1x3x326xbf16, #tpu.memory_space<vmem>>, vector<1x3x288xbf16>
    %32 = vector.shape_cast %31 : vector<1x3x288xbf16> to vector<3x288xbf16>
    %c5 = arith.constant 5 : index
    %c0_30 = arith.constant 0 : index
    %c0_31 = arith.constant 0 : index
    %33 = vector.load %arg2[%c5, %c0_30, %c0_31] : memref<9x32x3xbf16, #tpu.memory_space<vmem>>, vector<1x32x3xbf16>
    %34 = vector.shape_cast %33 : vector<1x32x3xbf16> to vector<32x3xbf16>
    %cst_32 = arith.constant dense<0.000000e+00> : vector<32x288xf32>
    %35 = tpu.matmul %34, %32, %cst_32 {dimension_numbers = #tpu.dot_dimension_numbers<[1], [0], [0], [1], [0, 0, 1, 1], [], []>} : vector<32x3xbf16>, vector<3x288xbf16>, vector<32x288xf32> -> vector<32x288xf32>
    %36 = arith.addf %30, %35 : vector<32x288xf32>
    %c0_33 = arith.constant 0 : index
    %c0_34 = arith.constant 0 : index
    %c36 = arith.constant 36 : index
    %37 = vector.load %arg1[%c0_33, %c0_34, %c36] : memref<1x3x326xbf16, #tpu.memory_space<vmem>>, vector<1x3x288xbf16>
    %38 = vector.shape_cast %37 : vector<1x3x288xbf16> to vector<3x288xbf16>
    %c6 = arith.constant 6 : index
    %c0_35 = arith.constant 0 : index
    %c0_36 = arith.constant 0 : index
    %39 = vector.load %arg2[%c6, %c0_35, %c0_36] : memref<9x32x3xbf16, #tpu.memory_space<vmem>>, vector<1x32x3xbf16>
    %40 = vector.shape_cast %39 : vector<1x32x3xbf16> to vector<32x3xbf16>
    %cst_37 = arith.constant dense<0.000000e+00> : vector<32x288xf32>
    %41 = tpu.matmul %40, %38, %cst_37 {dimension_numbers = #tpu.dot_dimension_numbers<[1], [0], [0], [1], [0, 0, 1, 1], [], []>} : vector<32x3xbf16>, vector<3x288xbf16>, vector<32x288xf32> -> vector<32x288xf32>
    %42 = arith.addf %36, %41 : vector<32x288xf32>
    %c0_38 = arith.constant 0 : index
    %c0_39 = arith.constant 0 : index
    %c37 = arith.constant 37 : index
    %43 = vector.load %arg1[%c0_38, %c0_39, %c37] : memref<1x3x326xbf16, #tpu.memory_space<vmem>>, vector<1x3x288xbf16>
    %44 = vector.shape_cast %43 : vector<1x3x288xbf16> to vector<3x288xbf16>
    %c7 = arith.constant 7 : index
    %c0_40 = arith.constant 0 : index
    %c0_41 = arith.constant 0 : index
    %45 = vector.load %arg2[%c7, %c0_40, %c0_41] : memref<9x32x3xbf16, #tpu.memory_space<vmem>>, vector<1x32x3xbf16>
    %46 = vector.shape_cast %45 : vector<1x32x3xbf16> to vector<32x3xbf16>
    %cst_42 = arith.constant dense<0.000000e+00> : vector<32x288xf32>
    %47 = tpu.matmul %46, %44, %cst_42 {dimension_numbers = #tpu.dot_dimension_numbers<[1], [0], [0], [1], [0, 0, 1, 1], [], []>} : vector<32x3xbf16>, vector<3x288xbf16>, vector<32x288xf32> -> vector<32x288xf32>
    %48 = arith.addf %42, %47 : vector<32x288xf32>
    %c0_43 = arith.constant 0 : index
    %c0_44 = arith.constant 0 : index
    %c38 = arith.constant 38 : index
    %49 = vector.load %arg1[%c0_43, %c0_44, %c38] : memref<1x3x326xbf16, #tpu.memory_space<vmem>>, vector<1x3x288xbf16>
    %50 = vector.shape_cast %49 : vector<1x3x288xbf16> to vector<3x288xbf16>
    %c8 = arith.constant 8 : index
    %c0_45 = arith.constant 0 : index
    %c0_46 = arith.constant 0 : index
    %51 = vector.load %arg2[%c8, %c0_45, %c0_46] : memref<9x32x3xbf16, #tpu.memory_space<vmem>>, vector<1x32x3xbf16>
    %52 = vector.shape_cast %51 : vector<1x32x3xbf16> to vector<32x3xbf16>
    %cst_47 = arith.constant dense<0.000000e+00> : vector<32x288xf32>
    %53 = tpu.matmul %52, %50, %cst_47 {dimension_numbers = #tpu.dot_dimension_numbers<[1], [0], [0], [1], [0, 0, 1, 1], [], []>} : vector<32x3xbf16>, vector<3x288xbf16>, vector<32x288xf32> -> vector<32x288xf32>
    %54 = arith.addf %48, %53 : vector<32x288xf32>
    %c0_48 = arith.constant 0 : index
    %c0_49 = arith.constant 0 : index
    %55 = vector.load %arg3[%c0_48, %c0_49] : memref<32x1xf32, #tpu.memory_space<vmem>>, vector<32x1xf32>
    %56 = vector.broadcast %55 : vector<32x1xf32> to vector<32x288xf32>
    %57 = arith.addf %54, %56 : vector<32x288xf32>
    %cst_50 = arith.constant 0.000000e+00 : f32
    %58 = vector.broadcast %cst_50 : f32 to vector<32x288xf32>
    %59 = arith.maximumf %57, %58 : vector<32x288xf32>
    %60 = arith.mulf %59, %59 : vector<32x288xf32>
    %cst_51 = arith.constant dense<0.000000e+00> : vector<288xf32>
    %61 = vector.multi_reduction <add>, %60, %cst_51 [0] : vector<32x288xf32> to vector<288xf32>
    %62 = vector.shape_cast %61 : vector<288xf32> to vector<1x288xf32>
    %cst_52 = arith.constant 9.99999996E-13 : f32
    %63 = vector.broadcast %cst_52 : f32 to vector<1x288xf32>
    %64 = arith.addf %62, %63 : vector<1x288xf32>
    %65 = math.rsqrt %64 : vector<1x288xf32>
    %66 = vector.broadcast %65 : vector<1x288xf32> to vector<32x288xf32>
    %67 = arith.mulf %59, %66 : vector<32x288xf32>
    %68 = arith.truncf %67 : vector<32x288xf32> to vector<32x288xbf16>
    %c0_53 = arith.constant 0 : index
    %c0_54 = arith.constant 0 : index
    %c0_55 = arith.constant 0 : index
    %69 = vector.load %arg4[%c0_53, %c0_54, %c0_55] : memref<1x32x288xbf16, #tpu.memory_space<vmem>>, vector<1x32x288xbf16>
    %70 = vector.shape_cast %69 : vector<1x32x288xbf16> to vector<32x288xbf16>
    %71 = vector.shape_cast %68 : vector<32x288xbf16> to vector<1x32x288xbf16>
    tpu.vector_store %arg4[%c0_53, %c0_54, %c0_55], %71 {strides = array<i32>} : memref<1x32x288xbf16, #tpu.memory_space<vmem>>, vector<1x32x288xbf16>,
    return
  }
  func.func @transform_0(%arg0: i32) -> (i32, i32, i32) {
    %c0_i32 = arith.constant 0 : i32
    %c0_i32_0 = arith.constant 0 : i32
    %c0_i32_1 = arith.constant 0 : i32
    return %arg0, %c0_i32, %c0_i32_0 : i32, i32, i32
  }
  func.func @transform_1(%arg0: i32) -> (i32, i32, i32) {
    %c0_i32 = arith.constant 0 : i32
    %c0_i32_0 = arith.constant 0 : i32
    %c0_i32_1 = arith.constant 0 : i32
    %c0_i32_2 = arith.constant 0 : i32
    return %c0_i32, %c0_i32_0, %c0_i32_1 : i32, i32, i32
  }
  func.func @transform_2(%arg0: i32) -> (i32, i32) {
    %c0_i32 = arith.constant 0 : i32
    %c0_i32_0 = arith.constant 0 : i32
    %c0_i32_1 = arith.constant 0 : i32
    return %c0_i32, %c0_i32_0 : i32, i32
  }
  func.func @transform_3(%arg0: i32) -> (i32, i32, i32) {
    %c0_i32 = arith.constant 0 : i32
    %c0_i32_0 = arith.constant 0 : i32
    %c0_i32_1 = arith.constant 0 : i32
    return %arg0, %c0_i32, %c0_i32_0 : i32, i32, i32
  }
}

module attributes {stable_mosaic.version = 11 : i64} {
  func.func @kernel(%arg0: i32, %arg1: memref<1x3x102xbf16, #tpu.memory_space<vmem>>, %arg2: memref<9x32x3xbf16, #tpu.memory_space<vmem>>, %arg3: memref<32x1xf32, #tpu.memory_space<vmem>>, %arg4: memref<1x32x80xbf16, #tpu.memory_space<vmem>>) attributes {dimension_semantics = [#tpu.dimension_semantics<parallel>], iteration_bounds = array<i64: 3>, scalar_prefetch = 0 : i64, scratch_operands = 0 : i64, tpu.core_type = #tpu.core_type<tc>, window_params = [{transform_indices = @transform_0, window_bounds = array<i64: 1, 3, 102>}, {pipeline_mode = #tpu.pipeline_mode<synchronous>, transform_indices = @transform_1, window_bounds = array<i64: 9, 32, 3>}, {pipeline_mode = #tpu.pipeline_mode<synchronous>, transform_indices = @transform_2, window_bounds = array<i64: 32, 1>}, {transform_indices = @transform_3, window_bounds = array<i64: 1, 32, 80>}]} {
    %cst = arith.constant 0.000000e+00 : f32
    %0 = vector.broadcast %cst : f32 to vector<32x80xf32>
    %c0 = arith.constant 0 : index
    %c0_0 = arith.constant 0 : index
    %c0_1 = arith.constant 0 : index
    %1 = vector.load %arg1[%c0, %c0_0, %c0_1] : memref<1x3x102xbf16, #tpu.memory_space<vmem>>, vector<1x3x80xbf16>
    %2 = vector.shape_cast %1 : vector<1x3x80xbf16> to vector<3x80xbf16>
    %c0_2 = arith.constant 0 : index
    %c0_3 = arith.constant 0 : index
    %c0_4 = arith.constant 0 : index
    %3 = vector.load %arg2[%c0_2, %c0_3, %c0_4] : memref<9x32x3xbf16, #tpu.memory_space<vmem>>, vector<1x32x3xbf16>
    %4 = vector.shape_cast %3 : vector<1x32x3xbf16> to vector<32x3xbf16>
    %cst_5 = arith.constant dense<0.000000e+00> : vector<32x80xf32>
    %5 = tpu.matmul %4, %2, %cst_5 {dimension_numbers = #tpu.dot_dimension_numbers<[1], [0], [0], [1], [0, 0, 1, 1], [], []>} : vector<32x3xbf16>, vector<3x80xbf16>, vector<32x80xf32> -> vector<32x80xf32>
    %6 = arith.addf %0, %5 : vector<32x80xf32>
    %c0_6 = arith.constant 0 : index
    %c0_7 = arith.constant 0 : index
    %c1 = arith.constant 1 : index
    %7 = vector.load %arg1[%c0_6, %c0_7, %c1] : memref<1x3x102xbf16, #tpu.memory_space<vmem>>, vector<1x3x80xbf16>
    %8 = vector.shape_cast %7 : vector<1x3x80xbf16> to vector<3x80xbf16>
    %c1_8 = arith.constant 1 : index
    %c0_9 = arith.constant 0 : index
    %c0_10 = arith.constant 0 : index
    %9 = vector.load %arg2[%c1_8, %c0_9, %c0_10] : memref<9x32x3xbf16, #tpu.memory_space<vmem>>, vector<1x32x3xbf16>
    %10 = vector.shape_cast %9 : vector<1x32x3xbf16> to vector<32x3xbf16>
    %cst_11 = arith.constant dense<0.000000e+00> : vector<32x80xf32>
    %11 = tpu.matmul %10, %8, %cst_11 {dimension_numbers = #tpu.dot_dimension_numbers<[1], [0], [0], [1], [0, 0, 1, 1], [], []>} : vector<32x3xbf16>, vector<3x80xbf16>, vector<32x80xf32> -> vector<32x80xf32>
    %12 = arith.addf %6, %11 : vector<32x80xf32>
    %c0_12 = arith.constant 0 : index
    %c0_13 = arith.constant 0 : index
    %c2 = arith.constant 2 : index
    %13 = vector.load %arg1[%c0_12, %c0_13, %c2] : memref<1x3x102xbf16, #tpu.memory_space<vmem>>, vector<1x3x80xbf16>
    %14 = vector.shape_cast %13 : vector<1x3x80xbf16> to vector<3x80xbf16>
    %c2_14 = arith.constant 2 : index
    %c0_15 = arith.constant 0 : index
    %c0_16 = arith.constant 0 : index
    %15 = vector.load %arg2[%c2_14, %c0_15, %c0_16] : memref<9x32x3xbf16, #tpu.memory_space<vmem>>, vector<1x32x3xbf16>
    %16 = vector.shape_cast %15 : vector<1x32x3xbf16> to vector<32x3xbf16>
    %cst_17 = arith.constant dense<0.000000e+00> : vector<32x80xf32>
    %17 = tpu.matmul %16, %14, %cst_17 {dimension_numbers = #tpu.dot_dimension_numbers<[1], [0], [0], [1], [0, 0, 1, 1], [], []>} : vector<32x3xbf16>, vector<3x80xbf16>, vector<32x80xf32> -> vector<32x80xf32>
    %18 = arith.addf %12, %17 : vector<32x80xf32>
    %c0_18 = arith.constant 0 : index
    %c0_19 = arith.constant 0 : index
    %c10 = arith.constant 10 : index
    %19 = vector.load %arg1[%c0_18, %c0_19, %c10] : memref<1x3x102xbf16, #tpu.memory_space<vmem>>, vector<1x3x80xbf16>
    %20 = vector.shape_cast %19 : vector<1x3x80xbf16> to vector<3x80xbf16>
    %c3 = arith.constant 3 : index
    %c0_20 = arith.constant 0 : index
    %c0_21 = arith.constant 0 : index
    %21 = vector.load %arg2[%c3, %c0_20, %c0_21] : memref<9x32x3xbf16, #tpu.memory_space<vmem>>, vector<1x32x3xbf16>
    %22 = vector.shape_cast %21 : vector<1x32x3xbf16> to vector<32x3xbf16>
    %cst_22 = arith.constant dense<0.000000e+00> : vector<32x80xf32>
    %23 = tpu.matmul %22, %20, %cst_22 {dimension_numbers = #tpu.dot_dimension_numbers<[1], [0], [0], [1], [0, 0, 1, 1], [], []>} : vector<32x3xbf16>, vector<3x80xbf16>, vector<32x80xf32> -> vector<32x80xf32>
    %24 = arith.addf %18, %23 : vector<32x80xf32>
    %c0_23 = arith.constant 0 : index
    %c0_24 = arith.constant 0 : index
    %c11 = arith.constant 11 : index
    %25 = vector.load %arg1[%c0_23, %c0_24, %c11] : memref<1x3x102xbf16, #tpu.memory_space<vmem>>, vector<1x3x80xbf16>
    %26 = vector.shape_cast %25 : vector<1x3x80xbf16> to vector<3x80xbf16>
    %c4 = arith.constant 4 : index
    %c0_25 = arith.constant 0 : index
    %c0_26 = arith.constant 0 : index
    %27 = vector.load %arg2[%c4, %c0_25, %c0_26] : memref<9x32x3xbf16, #tpu.memory_space<vmem>>, vector<1x32x3xbf16>
    %28 = vector.shape_cast %27 : vector<1x32x3xbf16> to vector<32x3xbf16>
    %cst_27 = arith.constant dense<0.000000e+00> : vector<32x80xf32>
    %29 = tpu.matmul %28, %26, %cst_27 {dimension_numbers = #tpu.dot_dimension_numbers<[1], [0], [0], [1], [0, 0, 1, 1], [], []>} : vector<32x3xbf16>, vector<3x80xbf16>, vector<32x80xf32> -> vector<32x80xf32>
    %30 = arith.addf %24, %29 : vector<32x80xf32>
    %c0_28 = arith.constant 0 : index
    %c0_29 = arith.constant 0 : index
    %c12 = arith.constant 12 : index
    %31 = vector.load %arg1[%c0_28, %c0_29, %c12] : memref<1x3x102xbf16, #tpu.memory_space<vmem>>, vector<1x3x80xbf16>
    %32 = vector.shape_cast %31 : vector<1x3x80xbf16> to vector<3x80xbf16>
    %c5 = arith.constant 5 : index
    %c0_30 = arith.constant 0 : index
    %c0_31 = arith.constant 0 : index
    %33 = vector.load %arg2[%c5, %c0_30, %c0_31] : memref<9x32x3xbf16, #tpu.memory_space<vmem>>, vector<1x32x3xbf16>
    %34 = vector.shape_cast %33 : vector<1x32x3xbf16> to vector<32x3xbf16>
    %cst_32 = arith.constant dense<0.000000e+00> : vector<32x80xf32>
    %35 = tpu.matmul %34, %32, %cst_32 {dimension_numbers = #tpu.dot_dimension_numbers<[1], [0], [0], [1], [0, 0, 1, 1], [], []>} : vector<32x3xbf16>, vector<3x80xbf16>, vector<32x80xf32> -> vector<32x80xf32>
    %36 = arith.addf %30, %35 : vector<32x80xf32>
    %c0_33 = arith.constant 0 : index
    %c0_34 = arith.constant 0 : index
    %c20 = arith.constant 20 : index
    %37 = vector.load %arg1[%c0_33, %c0_34, %c20] : memref<1x3x102xbf16, #tpu.memory_space<vmem>>, vector<1x3x80xbf16>
    %38 = vector.shape_cast %37 : vector<1x3x80xbf16> to vector<3x80xbf16>
    %c6 = arith.constant 6 : index
    %c0_35 = arith.constant 0 : index
    %c0_36 = arith.constant 0 : index
    %39 = vector.load %arg2[%c6, %c0_35, %c0_36] : memref<9x32x3xbf16, #tpu.memory_space<vmem>>, vector<1x32x3xbf16>
    %40 = vector.shape_cast %39 : vector<1x32x3xbf16> to vector<32x3xbf16>
    %cst_37 = arith.constant dense<0.000000e+00> : vector<32x80xf32>
    %41 = tpu.matmul %40, %38, %cst_37 {dimension_numbers = #tpu.dot_dimension_numbers<[1], [0], [0], [1], [0, 0, 1, 1], [], []>} : vector<32x3xbf16>, vector<3x80xbf16>, vector<32x80xf32> -> vector<32x80xf32>
    %42 = arith.addf %36, %41 : vector<32x80xf32>
    %c0_38 = arith.constant 0 : index
    %c0_39 = arith.constant 0 : index
    %c21 = arith.constant 21 : index
    %43 = vector.load %arg1[%c0_38, %c0_39, %c21] : memref<1x3x102xbf16, #tpu.memory_space<vmem>>, vector<1x3x80xbf16>
    %44 = vector.shape_cast %43 : vector<1x3x80xbf16> to vector<3x80xbf16>
    %c7 = arith.constant 7 : index
    %c0_40 = arith.constant 0 : index
    %c0_41 = arith.constant 0 : index
    %45 = vector.load %arg2[%c7, %c0_40, %c0_41] : memref<9x32x3xbf16, #tpu.memory_space<vmem>>, vector<1x32x3xbf16>
    %46 = vector.shape_cast %45 : vector<1x32x3xbf16> to vector<32x3xbf16>
    %cst_42 = arith.constant dense<0.000000e+00> : vector<32x80xf32>
    %47 = tpu.matmul %46, %44, %cst_42 {dimension_numbers = #tpu.dot_dimension_numbers<[1], [0], [0], [1], [0, 0, 1, 1], [], []>} : vector<32x3xbf16>, vector<3x80xbf16>, vector<32x80xf32> -> vector<32x80xf32>
    %48 = arith.addf %42, %47 : vector<32x80xf32>
    %c0_43 = arith.constant 0 : index
    %c0_44 = arith.constant 0 : index
    %c22 = arith.constant 22 : index
    %49 = vector.load %arg1[%c0_43, %c0_44, %c22] : memref<1x3x102xbf16, #tpu.memory_space<vmem>>, vector<1x3x80xbf16>
    %50 = vector.shape_cast %49 : vector<1x3x80xbf16> to vector<3x80xbf16>
    %c8 = arith.constant 8 : index
    %c0_45 = arith.constant 0 : index
    %c0_46 = arith.constant 0 : index
    %51 = vector.load %arg2[%c8, %c0_45, %c0_46] : memref<9x32x3xbf16, #tpu.memory_space<vmem>>, vector<1x32x3xbf16>
    %52 = vector.shape_cast %51 : vector<1x32x3xbf16> to vector<32x3xbf16>
    %cst_47 = arith.constant dense<0.000000e+00> : vector<32x80xf32>
    %53 = tpu.matmul %52, %50, %cst_47 {dimension_numbers = #tpu.dot_dimension_numbers<[1], [0], [0], [1], [0, 0, 1, 1], [], []>} : vector<32x3xbf16>, vector<3x80xbf16>, vector<32x80xf32> -> vector<32x80xf32>
    %54 = arith.addf %48, %53 : vector<32x80xf32>
    %c0_48 = arith.constant 0 : index
    %c0_49 = arith.constant 0 : index
    %55 = vector.load %arg3[%c0_48, %c0_49] : memref<32x1xf32, #tpu.memory_space<vmem>>, vector<32x1xf32>
    %56 = vector.broadcast %55 : vector<32x1xf32> to vector<32x80xf32>
    %57 = arith.addf %54, %56 : vector<32x80xf32>
    %cst_50 = arith.constant 0.000000e+00 : f32
    %58 = vector.broadcast %cst_50 : f32 to vector<32x80xf32>
    %59 = arith.maximumf %57, %58 : vector<32x80xf32>
    %60 = arith.mulf %59, %59 : vector<32x80xf32>
    %cst_51 = arith.constant dense<0.000000e+00> : vector<80xf32>
    %61 = vector.multi_reduction <add>, %60, %cst_51 [0] : vector<32x80xf32> to vector<80xf32>
    %62 = vector.shape_cast %61 : vector<80xf32> to vector<1x80xf32>
    %cst_52 = arith.constant 9.99999996E-13 : f32
    %63 = vector.broadcast %cst_52 : f32 to vector<1x80xf32>
    %64 = arith.addf %62, %63 : vector<1x80xf32>
    %65 = math.rsqrt %64 : vector<1x80xf32>
    %66 = vector.broadcast %65 : vector<1x80xf32> to vector<32x80xf32>
    %67 = arith.mulf %59, %66 : vector<32x80xf32>
    %68 = arith.truncf %67 : vector<32x80xf32> to vector<32x80xbf16>
    %c0_53 = arith.constant 0 : index
    %c0_54 = arith.constant 0 : index
    %c0_55 = arith.constant 0 : index
    %69 = vector.load %arg4[%c0_53, %c0_54, %c0_55] : memref<1x32x80xbf16, #tpu.memory_space<vmem>>, vector<1x32x80xbf16>
    %70 = vector.shape_cast %69 : vector<1x32x80xbf16> to vector<32x80xbf16>
    %71 = vector.shape_cast %68 : vector<32x80xbf16> to vector<1x32x80xbf16>
    tpu.vector_store %arg4[%c0_53, %c0_54, %c0_55], %71 {strides = array<i32>} : memref<1x32x80xbf16, #tpu.memory_space<vmem>>, vector<1x32x80xbf16>,
    return
  }
  func.func @transform_0(%arg0: i32) -> (i32, i32, i32) {
    %c0_i32 = arith.constant 0 : i32
    %c0_i32_0 = arith.constant 0 : i32
    %c0_i32_1 = arith.constant 0 : i32
    return %arg0, %c0_i32, %c0_i32_0 : i32, i32, i32
  }
  func.func @transform_1(%arg0: i32) -> (i32, i32, i32) {
    %c0_i32 = arith.constant 0 : i32
    %c0_i32_0 = arith.constant 0 : i32
    %c0_i32_1 = arith.constant 0 : i32
    %c0_i32_2 = arith.constant 0 : i32
    return %c0_i32, %c0_i32_0, %c0_i32_1 : i32, i32, i32
  }
  func.func @transform_2(%arg0: i32) -> (i32, i32) {
    %c0_i32 = arith.constant 0 : i32
    %c0_i32_0 = arith.constant 0 : i32
    %c0_i32_1 = arith.constant 0 : i32
    return %c0_i32, %c0_i32_0 : i32, i32
  }
  func.func @transform_3(%arg0: i32) -> (i32, i32, i32) {
    %c0_i32 = arith.constant 0 : i32
    %c0_i32_0 = arith.constant 0 : i32
    %c0_i32_1 = arith.constant 0 : i32
    return %arg0, %c0_i32, %c0_i32_0 : i32, i32, i32
  }
}

module attributes {stable_mosaic.version = 11 : i64} {
  func.func @_os2d_head_kernel(%arg0: i32, %arg1: i32, %arg2: memref<1x32x256xbf16, #tpu.memory_space<vmem>>, %arg3: memref<39x32xbf16, #tpu.memory_space<vmem>>, %arg4: memref<1x39x256xf32, #tpu.memory_space<vmem>>) attributes {dimension_semantics = [#tpu.dimension_semantics<parallel>, #tpu.dimension_semantics<parallel>], iteration_bounds = array<i64: 2, 1>, scalar_prefetch = 0 : i64, scratch_operands = 0 : i64, tpu.core_type = #tpu.core_type<tc>, window_params = [{transform_indices = @transform_0, window_bounds = array<i64: 1, 32, 256>}, {pipeline_mode = #tpu.pipeline_mode<synchronous>, transform_indices = @transform_1, window_bounds = array<i64: 39, 32>}, {transform_indices = @transform_2, window_bounds = array<i64: 1, 39, 256>}]} {
    %c0 = arith.constant 0 : index
    %c0_0 = arith.constant 0 : index
    %0 = vector.load %arg3[%c0, %c0_0] : memref<39x32xbf16, #tpu.memory_space<vmem>>, vector<39x32xbf16>
    %c0_1 = arith.constant 0 : index
    %c0_2 = arith.constant 0 : index
    %c0_3 = arith.constant 0 : index
    %1 = vector.load %arg2[%c0_1, %c0_2, %c0_3] : memref<1x32x256xbf16, #tpu.memory_space<vmem>>, vector<1x32x256xbf16>
    %2 = vector.shape_cast %1 : vector<1x32x256xbf16> to vector<32x256xbf16>
    %cst = arith.constant dense<0.000000e+00> : vector<39x256xf32>
    %3 = tpu.matmul %0, %2, %cst {dimension_numbers = #tpu.dot_dimension_numbers<[1], [0], [0], [1], [0, 0, 1, 1], [], []>} : vector<39x32xbf16>, vector<32x256xbf16>, vector<39x256xf32> -> vector<39x256xf32>
    %c0_4 = arith.constant 0 : index
    %c0_5 = arith.constant 0 : index
    %c0_6 = arith.constant 0 : index
    %4 = vector.load %arg4[%c0_4, %c0_5, %c0_6] : memref<1x39x256xf32, #tpu.memory_space<vmem>>, vector<1x39x256xf32>
    %5 = vector.shape_cast %4 : vector<1x39x256xf32> to vector<39x256xf32>
    %6 = vector.shape_cast %3 : vector<39x256xf32> to vector<1x39x256xf32>
    tpu.vector_store %arg4[%c0_4, %c0_5, %c0_6], %6 {strides = array<i32>} : memref<1x39x256xf32, #tpu.memory_space<vmem>>, vector<1x39x256xf32>,
    return
  }
  func.func @transform_0(%arg0: i32, %arg1: i32) -> (i32, i32, i32) {
    %c0_i32 = arith.constant 0 : i32
    %c0_i32_0 = arith.constant 0 : i32
    return %arg0, %c0_i32, %arg1 : i32, i32, i32
  }
  func.func @transform_1(%arg0: i32, %arg1: i32) -> (i32, i32) {
    %c0_i32 = arith.constant 0 : i32
    %c0_i32_0 = arith.constant 0 : i32
    %c0_i32_1 = arith.constant 0 : i32
    return %c0_i32, %c0_i32_0 : i32, i32
  }
  func.func @transform_2(%arg0: i32, %arg1: i32) -> (i32, i32, i32) {
    %c0_i32 = arith.constant 0 : i32
    %c0_i32_0 = arith.constant 0 : i32
    return %arg0, %c0_i32, %arg1 : i32, i32, i32
  }
}

</mosaic_0001>

<bundles_post_ra>
// kernel: os2d_forward.4
= control target key start
LH: loop header
LB: loop body
LE: loop exit
PB: predicated region body
PF: predicated region fallthrough
CT: control target
= control target key end

     0   :  { %s1365_s12 = smov 0   ;;  %s1470_s0 = inlined_call_operand.vmem [shape: bf16[3,3,102], index: 0, kind: input, shape index: {}]   ;;  %s1471_s1 = inlined_call_operand.vmem [shape: bf16[9,32,3], index: 1, kind: input, shape index: {}]   ;;  %s1472_s2 = inlined_call_operand.vmem [shape: f32[32,1], index: 2, kind: input, shape index: {}]   ;;  %s1473_s3 = inlined_call_operand.vmem [shape: bf16[3,32,80], index: 3, kind: output, shape index: {}]  }
   0x1 LB: > { %s1078_s13 = sadd.s32 4294967295, %s1332_s12   ;;  %p1082_p0 = scmp.ge.s32.totalorder %s1332_s12, 1  ;;  %s1332_s12 = sphi %s1365_s12, %s13_s12  }
   0x2   : > { %p136_p1 = scmp.lt.s32.totalorder %s1332_s12, 4 }
   0x4   : > { %p137_p2 = pnand %p1082_p0, %p136_p1 }
   0x5   : > { %p159_p3 = scmp.lt.s32.totalorder (!%p137_p2), %s1078_s13, 2  ;;  %v193_v0 = vlaneseq (!%p137_p2)  ;;  %v1334_v1 = vmov (!%p137_p2), 1983009808   ;;  %vm199_vm0 = vcmask (!%p137_p2), 23552   ;;  %v1306_v4 = vld [vmem:[%s1471_s1 + $0x40] sm:$0xff] (!%p137_p2)   ;;  %v1308_v7 = vld [vmem:[%s1471_s1 + $0x10] sm:$0xff] (!%p137_p2)  }
   0x6   : > { %140 = sbr.rel (%p137_p2) target bundleno = 447 (0x1bf), region = 32  ;;  %v191_v2 = vunpack.c.l.s4 (!%p137_p2), %v1334_v1  ;;  %1225 = vmatprep.mubr.msk.bf16.mxu0 (!%p137_p2), %vm199_vm0, %v1306_v4  ;;  %s1335_s22 = smov (!%p137_p2), 117   ;;  %1201 = vmatprep.mubr.msk.bf16.mxu1 (!%p137_p2), %vm199_vm0, %v1308_v7  ;;  %v947_v11 = vld [vmem:[%s1472_s2 + $0x8] sm:$0xff] (!%p137_p2)  ;;  %v946_v12 = vld [vmem:[%s1472_s2] sm:$0xff] (!%p137_p2)  ;;  %v1343_v13 = vmov (!%p137_p2), 0   ;;  %v948_v14 = vld [vmem:[%s1472_s2 + $0x10] sm:$0xff] (!%p137_p2) }
   0x7   : > { %v194_v3 = vshrl.u32 (!%p137_p2), %v193_v0, 7  ;;  %s1336_s23 = smov (!%p137_p2), 116   ;;  %s1337_s24 = smov (!%p137_p2), 127   ;;  %1305 = vset.pattern.permute.xlu1 (!%p137_p2), %v1343_v13  ;;  %1304 = vset.pattern.permute.xlu0 (!%p137_p2), %v1343_v13  ;;  %v949_v15 = vld [vmem:[%s1472_s2 + $0x18] sm:$0xff] (!%p137_p2)  ;;  %vm206_vm1 = vcmask (!%p137_p2), 1040384   ;;  %vm207_vm2 = vcmask (!%p137_p2), 1041408  }
   0x8   : > { %v192_v5 = vunpack.c.0.s8 (!%p137_p2), %v191_v2  ;;  %s1338_s25 = smov (!%p137_p2), 108   ;;  %s1339_s26 = smov (!%p137_p2), 107   ;;  %v1344_v16 = vmov (!%p137_p2), 65535   ;;  %v1307_v23 = vld [vmem:[%s1471_s1 + $0x48] sm:$0xff] (!%p137_p2)   ;;  %v1310_v28 = vld [vmem:[%s1471_s1 + $0x50] sm:$0xff] (!%p137_p2)   ;;  %v1309_v30 = vld [vmem:[%s1471_s1 + $0x18] sm:$0xff] (!%p137_p2)  }
   0x9   : > { %s1340_s27 = smov (!%p137_p2), 126   ;;  %s1341_s28 = smov (!%p137_p2), 106   ;;  %v208_v17 = vsel (!%p137_p2), %vm206_vm1, 4294967295, %v1344_v16  ;;  %v1312_v31 = vld [vmem:[%s1471_s1] sm:$0xff] (!%p137_p2)   ;;  %v1311_v35 = vld [vmem:[%s1471_s1 + $0x58] sm:$0xff] (!%p137_p2)   ;;  %v1313_v39 = vld [vmem:[%s1471_s1 + $0x8] sm:$0xff] (!%p137_p2)  }
   0xa   : > { %v195_v6 = vsub.s32 (!%p137_p2), %v192_v5, %v194_v3  ;;  %s1342_s29 = smov (!%p137_p2), 118   ;;  %v209_v18 = vsel (!%p137_p2), %vm207_vm2, %v208_v17, 0  ;;  %v1314_v36 = vld [vmem:[%s1471_s1 + $0x60] sm:$0xff] (!%p137_p2)   ;;  %v1315_v43 = vld [vmem:[%s1471_s1 + $0x68] sm:$0xff] (!%p137_p2)   ;;  %v1318_v44 = vld [vmem:[%s1471_s1 + $0x70] sm:$0xff] (!%p137_p2)   ;;  %vm982_vm3 = vcmask (!%p137_p2), 654336  }
   0xb   : > { %v1316_v40 = vld [vmem:[%s1471_s1 + $0x20] sm:$0xff] (!%p137_p2)   ;;  %v1317_v46 = vld [vmem:[%s1471_s1 + $0x28] sm:$0xff] (!%p137_p2)   ;;  %v1320_v47 = vld [vmem:[%s1471_s1 + $0x30] sm:$0xff] (!%p137_p2)   ;;  %vm1018_vm4 = vcmask (!%p137_p2), 650240  }
   0xc   : > { %v1319_v48 = vld [vmem:[%s1471_s1 + $0x78] sm:$0xff] (!%p137_p2)   ;;  %v1322_v49 = vld [vmem:[%s1471_s1 + $0x80] sm:$0xff] (!%p137_p2)   ;;  %v1323_v51 = vld [vmem:[%s1471_s1 + $0x88] sm:$0xff] (!%p137_p2)  }
   0xd   : > { %s1475_s13 = smov (!%p159_p3, %s1078_s13), 2  ;;  %v1321_v50 = vld [vmem:[%s1471_s1 + $0x38] sm:$0xff]  }
   0xe   : > { %s1083_s16 = sshll.u32 %s1475_s13, 1  ;;  %s1167_s20 = sshll.u32 %s1475_s13, 4 }
   0xf   : > { %s162_s19 = scalar_lea.vmem %s1470_s0, %s1083_s16 }
  0x10   : > { %v1122_v8 = vld.sshfl [vmem:[%s162_s19] sm:$0x3 pattern:$0x76325410] }
  0x11   : > { %v169_v9 = vld [vmem:[%s162_s19] sm:$0x3]  ;;  %530 = vrot.lane.b32.xlu0 %v1122_v8, %s1335_s22  ;;  %618 = vrot.lane.b32.xlu1 %v1122_v8, %s1336_s23  ;;  %s167_s23 = scalar_lea.vmem %s1473_s3, %s1167_s20 }
  0x12   : > { %v196_v10 = vrot.slane %v169_v9, %v195_v6  ;;  %v279_v29 = vand.u32 %v209_v18, %v169_v9 }
  0x15   : > { %197 = vrot.lane.b32.xlu0 %v196_v10, %s1337_s24  ;;  %706 = vrot.lane.b32.xlu1 %v1122_v8, %s1338_s25 }
  0x19   : > { %794 = vrot.lane.b32.xlu1 %v1122_v8, %s1339_s26  ;;  %354 = vrot.lane.b32.xlu0 %v1122_v8, %s1340_s27 }
  0x1d   : > { %882 = vrot.lane.b32.xlu1 %v1122_v8, %s1341_s28  ;;  %442 = vrot.lane.b32.xlu0 %v1122_v8, %s1342_s29 }
  0x21   : > { %957 = vperm.xlu1 %1305, %v947_v11   ;;  %952 = vperm.xlu0 %1304, %v946_v12  }
  0x25   : > { %962 = vperm.xlu1 %1305, %v948_v14   ;;  %967 = vperm.xlu0 %1304, %v949_v15  }
  0x83   : > { %v531_v19 = vpop.permute.xlu0 %530  ;;  %v619_v20 = vpop.permute.xlu1 %618 }
  0x84   : > { %v539_v21 = vand.u32 %v531_v19, %v209_v18  ;;  %v627_v22 = vand.u32 %v619_v20, %v209_v18 }
  0x86   : > { %1223 = vmatprep.subr.bf16.mxu0 %v539_v21 }
  0x87   : > { %1224 = vmatpush3.bf16.msra.mxu0 %v539_v21  ;;  %v198_v24 = vpop.permute.xlu0 %197  ;;  %v707_v25 = vpop.permute.xlu1 %706 }
  0x88   : > { %v211_v26 = vand.u32 %v209_v18, %v198_v24  ;;  %1229 = vmatprep.subr.bf16.mxu0 %v627_v22  ;;  %v715_v27 = vand.u32 %v707_v25, %v209_v18 }
  0x8a   : > { %1199 = vmatprep.subr.bf16.mxu1 %v211_v26  ;;  %1226 = vmatmul.mubr.msk.bf16.vlgmr.msra.gmra.mrb[0].mxu0 %vm199_vm0, %v1307_v23 }
  0x8b   : > { %1200 = vmatpush3.bf16.msra.mxu1 %v211_v26  ;;  %1230 = vmatpush3.bf16.msra.mxu0 %v627_v22  ;;  %v355_v32 = vpop.permute.xlu0 %354  ;;  %v795_v34 = vpop.permute.xlu1 %794 }
  0x8c   : > { %1231 = vmatprep.mubr.msk.bf16.mxu0 %vm199_vm0, %v1310_v28  ;;  %1235 = vmatprep.subr.bf16.mxu0 %v715_v27  ;;  %v363_v33 = vand.u32 %v355_v32, %v209_v18  ;;  %v803_v37 = vand.u32 %v795_v34, %v209_v18 }
  0x8d   : > { %1205 = vmatprep.subr.bf16.mxu1 %v279_v29 }
  0x8e   : > { %1202 = vmatmul.mubr.msk.bf16.vlgmr.msra.gmra.mrb[0].mxu1 %vm199_vm0, %v1309_v30 }
  0x8f   : > { %1206 = vmatpush3.bf16.msra.mxu1 %v279_v29  ;;  %1207 = vmatprep.mubr.msk.bf16.mxu1 %vm199_vm0, %v1312_v31  ;;  %v443_v38 = vpop.permute.xlu0 %442  ;;  %v883_v42 = vpop.permute.xlu1 %882 }
  0x90   : > { %1211 = vmatprep.subr.bf16.mxu1 %v363_v33  ;;  %v451_v41 = vand.u32 %v443_v38, %v209_v18  ;;  %v891_v45 = vand.u32 %v883_v42, %v209_v18 }
  0x96   : > { %1232 = vmatmul.mubr.msk.bf16.vlgmr.msra.gmra.mrb[0].mxu0 %vm199_vm0, %v1311_v35 }
  0x97   : > { %1236 = vmatpush3.bf16.msra.mxu0 %v715_v27  ;;  %1237 = vmatprep.mubr.msk.bf16.mxu0 %vm199_vm0, %v1314_v36 }
  0x98   : > { %1241 = vmatprep.subr.bf16.mxu0 %v803_v37 }
  0x9a   : > { %1208 = vmatmul.mubr.msk.bf16.vlgmr.msra.gmra.mrb[0].mxu1 %vm199_vm0, %v1313_v39 }
  0x9b   : > { %1212 = vmatpush3.bf16.msra.mxu1 %v363_v33  ;;  %1213 = vmatprep.mubr.msk.bf16.mxu1 %vm199_vm0, %v1316_v40 }
  0x9c   : > { %1217 = vmatprep.subr.bf16.mxu1 %v451_v41 }
  0xa0   : > { %v958_v55 = vpop.permute.xlu1 %957  ;;  %v953_v57 = vpop.permute.xlu0 %952 }
  0xa2   : > { %1238 = vmatmul.mubr.msk.bf16.vlgmr.msra.gmra.mrb[0].mxu0 %vm199_vm0, %v1315_v43 }
  0xa3   : > { %1242 = vmatpush3.bf16.msra.mxu0 %v803_v37  ;;  %1243 = vmatprep.mubr.msk.bf16.mxu0 %vm199_vm0, %v1318_v44 }
  0xa4   : > { %1247 = vmatprep.subr.bf16.mxu0 %v891_v45  ;;  %v963_v59 = vpop.permute.xlu1 %962  ;;  %v968_v0 = vpop.permute.xlu0 %967 }
  0xa6   : > { %1214 = vmatmul.mubr.msk.bf16.vlgmr.msra.gmra.mrb[0].mxu1 %vm199_vm0, %v1317_v46 }
  0xa7   : > { %1218 = vmatpush3.bf16.msra.mxu1 %v451_v41  ;;  %1219 = vmatprep.mubr.msk.bf16.mxu1 %vm199_vm0, %v1320_v47 }
  0xae   : > { %1244 = vmatmul.mubr.msk.bf16.vlgmr.msra.gmra.mrb[0].mxu0 %vm199_vm0, %v1319_v48 }
  0xaf   : > { %1248 = vmatpush3.bf16.msra.mxu0 %v891_v45  ;;  %1249 = vmatprep.mubr.msk.bf16.mxu0 %vm199_vm0, %v1322_v49 }
  0xb2   : > { %1220 = vmatmul.mubr.msk.bf16.vlgmr.msra.gmra.mrb[0].mxu1 %vm199_vm0, %v1321_v50 }
  0xba   : > { %1250 = vmatmul.mubr.msk.bf16.vlgmr.msra.gmra.mrb[0].mxu0 %vm199_vm0, %v1323_v51 }
 0x185   : > { %v1221_v52 = vpop.f32.mrb[0].mxu1 }
 0x186   : > { %v487_v53 = vpop.f32.mrb[1].mxu1 }
 0x187   : > { %v1222_v54 = vpop.f32.mrb[2].mxu1 }
 0x188   : > { %v490_v56 = vpop.f32.mrb[3].mxu1 }
 0x18d   : > { %v1251_v58 = vpop.f32.mrb[0].mxu0 }
 0x18e   : > { %v1253_v60 = vadd.f32 %v1251_v58, %v1221_v52  ;;  %v927_v61 = vpop.f32.mrb[1].mxu0 }
 0x18f   : > { %v1254_v62 = vadd.f32 %v927_v61, %v487_v53  ;;  %v1252_v63 = vpop.f32.mrb[2].mxu0 }
 0x190   : > { %v972_v1 = vadd.f32 %v1253_v60, %v963_v59  ;;  %v1255_v2 = vadd.f32 %v1252_v63, %v1222_v54  ;;  %v930_v3 = vpop.f32.mrb[3].mxu0 }
 0x191   : > { %v970_v4 = vadd.f32 %v1254_v62, %v953_v57  ;;  %v1256_v5 = vadd.f32 %v930_v3, %v490_v56 }
 0x192   : > { %v973_v6 = vadd.f32 %v1255_v2, %v968_v0  ;;  %v976_v8 = vmax.f32 %v972_v1, 0.0 }
 0x193   : > { %v974_v7 = vmax.f32 %v970_v4, 0.0  ;;  %v971_v9 = vadd.f32 %v1256_v5, %v958_v55 }
 0x194   : > { %v977_v12 = vmax.f32 %v973_v6, 0.0  ;;  %v980_v13 = vmul.f32 %v976_v8, %v976_v8 }
 0x195   : > { %v978_v10 = vmul.f32 %v974_v7, %v974_v7  ;;  %v975_v11 = vmax.f32 %v971_v9, 0.0 }
 0x196   : > { %v981_v17 = vmul.f32 %v977_v12, %v977_v12  ;;  %v986_v19 = vsel %vm982_vm3, %v980_v13, 0.0 }
 0x197   : > { %v979_v14 = vmul.f32 %v975_v11, %v975_v11  ;;  %v983_v15 = vsel %vm982_vm3, %v978_v10, 0.0 }
 0x198   : > { %v988_v21 = vsel %vm982_vm3, %v981_v17, 0.0 }
 0x199   : > { %v984_v16 = vsel %vm982_vm3, %v979_v14, 0.0 }
 0x19a   : > { %v985_v18 = vadd.f32 %v984_v16, %v983_v15 }
 0x19c   : > { %v987_v20 = vadd.f32 %v986_v19, %v985_v18 }
 0x19e   : > { %v989_v22 = vadd.f32 %v988_v21, %v987_v20 }
 0x1a0   : > { %v990_v23 = vrot.slane %v989_v22, 4 }
 0x1a2   : > { %v991_v24 = vadd.f32 %v990_v23, %v989_v22 }
 0x1a4   : > { %v992_v25 = vrot.slane %v991_v24, 2 }
 0x1a6   : > { %v993_v26 = vadd.f32 %v992_v25, %v991_v24 }
 0x1a8   : > { %v994_v27 = vrot.slane %v993_v26, 1 }
 0x1aa   : > { %v995_v28 = vadd.f32 %v994_v27, %v993_v26 }
 0x1ac   : > { %v996_v29 = vadd.f32 1e-12, %v995_v28 }
 0x1ae   : > { %1324 = vrsqrt.f32 %v996_v29 }
 0x1b8   : > { %v1325_v30 = vpop.eup %1324 }
 0x1b9   : > { %v998_v31 = vmul.f32 %v1325_v30, %v974_v7  ;;  %v999_v32 = vmul.f32 %v1325_v30, %v975_v11  ;;  %v1000_v33 = vmul.f32 %v1325_v30, %v976_v8  ;;  %v1001_v34 = vmul.f32 %v1325_v30, %v977_v12 }
 0x1bb   : > { %v1168_v35 = vpack.c.bf16 %v998_v31, %v998_v31  ;;  %v1169_v36 = vpack.c.bf16 %v999_v32, %v999_v32  ;;  %v1170_v37 = vpack.c.bf16 %v1000_v33, %v1000_v33  ;;  %v1171_v38 = vpack.c.bf16 %v1001_v34, %v1001_v34 }
 0x1bd   : > { %1019 = vst.msk [vmem:[%s167_s23] sm:$0xf] %vm1018_vm4, %v1168_v35  ;;  %1020 = vst.msk [vmem:[%s167_s23 + $0x4] sm:$0xf] %vm1018_vm4, %v1169_v36 }
 0x1be   : > { %1021 = vst.msk [vmem:[%s167_s23 + $0x8] sm:$0xf] %vm1018_vm4, %v1170_v37  ;;  %1022 = vst.msk [vmem:[%s167_s23 + $0xc] sm:$0xf] %vm1018_vm4, %v1171_v38 }
 0x1bf PF: > { %s13_s12 = sadd.s32 1, %s1332_s12  }
 0x1c0   : > { %p10_p4 = scmp.ge.s32.totalorder %s13_s12, 5  }
 0x1c2   :  { %12 = sbr.rel (!%p10_p4) target bundleno = 1 (0x1), region = 70 }

// kernel: os2d_forward.5
= control target key start
LH: loop header
LB: loop body
LE: loop exit
PB: predicated region body
PF: predicated region fallthrough
CT: control target
= control target key end

     0   :  { %s494_s9 = smov 0   ;;  %s496_s10 = smov 0   ;;  %s536_s0 = inlined_call_operand.vmem [shape: bf16[2,32,256], index: 0, kind: input, shape index: {}]   ;;  %s537_s1 = inlined_call_operand.vmem [shape: bf16[39,32], index: 1, kind: input, shape index: {}]   ;;  %s538_s2 = inlined_call_operand.vmem [shape: f32[2,39,256], index: 2, kind: output, shape index: {}]  }
   0x1   :  { %s498_s11 = smov 0  }
   0x2 LB: > { %s24_s12 = sadd.s32 1, %s472_s10  ;;  %p398_p0 = scmp.ge.s32.totalorder %s476_s11, 1  ;;  %s476_s11 = sphi %s498_s11, %s12_s11   ;;  %s472_s10 = sphi %s496_s10, %s540_s10   ;;  %s468_s9 = sphi %s494_s9, %s539_s9  }
   0x3   : > { %p26_p1 = scmp.ge.s32.totalorder %s24_s12, 2  ;;  %p133_p2 = scmp.lt.s32.totalorder %s476_s11, 3 }
   0x5   : > { %s542_s12 = smov (%p26_p1, %s24_s12), 0  ;;  %p134_p3 = pnand %p398_p0, %p133_p2 }
   0x6   : > { %p164_p4 = scmp.lt.s32.totalorder (!%p134_p3), %s468_s9, 1  ;;  %v478_v0 = vmov (!%p134_p3), 0   ;;  %v451_v5 = vld [vmem:[%s537_s1 + $0x8] sm:$0xff] (!%p134_p3)   ;;  %v452_v6 = vld [vmem:[%s537_s1] sm:$0xff] (!%p134_p3)   ;;  %vm226_vm0 = vcmask (!%p134_p3), 261120  }
   0x7   : > { %137 = sbr.rel (%p134_p3) target bundleno = 249 (0xf9), region = 28  ;;  %278 = vmatprep.mubr.bf16.mxu1 (!%p134_p3), %v478_v0  ;;  %268 = vmatprep.mubr.bf16.mxu0 (!%p134_p3), %v478_v0  ;;  %v453_v7 = vld [vmem:[%s537_s1 + $0x10] ss:$0 sps:$4 sm:$0xff] (!%p134_p3)  }
   0xe   : > { %s544_s9 = smov (!%p164_p4, %s468_s9), 1 }
   0xf   : > { %s414_s13 = sshll.u32 %s544_s9, 5  ;;  %s419_s23 = smul.u32 80, %s544_s9 }
  0x10   : > { %s171_s16 = scalar_lea.vmem %s536_s0, %s414_s13 }
  0x11   : > { %v445_v1 = vld [vmem:[%s171_s16 + $0x4] ss:$8 sps:$4 sm:$0xff]   ;;  %v447_v2 = vld [vmem:[%s171_s16] ss:$8 sps:$4 sm:$0xff]   ;;  %v448_v3 = vld [vmem:[%s171_s16 + $0x14] ss:$8 sps:$4 sm:$0xff]   ;;  %s181_s26 = scalar_lea.vmem %s538_s2, %s419_s23 }
  0x12   : > { %415 = vmatprep.subr.bf16.mxu1 %v445_v1  ;;  %236 = vmatprep.subr.bf16.mxu0 %v445_v1  ;;  %v450_v4 = vld [vmem:[%s171_s16 + $0x10] ss:$8 sps:$4 sm:$0xff]  }
  0x13   : > { %417 = vmatpush1.bf16.msra.mxu1 %v447_v2  ;;  %237 = vmatpush1.bf16.msra.mxu0 %v447_v2 }
  0x14   : > { %416 = vmatprep.subr.bf16.mxu1 %v448_v3  ;;  %238 = vmatprep.subr.bf16.mxu0 %v448_v3 }
  0x17   : > { %418 = vmatpush1.bf16.msra.mxu1 %v450_v4  ;;  %239 = vmatpush1.bf16.msra.mxu0 %v450_v4 }
  0x1a   : > { %410 = vmatmul.mubr.msk.bf16.vlgmr.msra.gmra.mrb[0].mxu1 %vm226_vm0, %v451_v5  ;;  %409 = vmatmul.mubr.msk.bf16.vlgmr.msra.gmra.mrb[0].mxu0 %vm226_vm0, %v452_v6 }
  0x1b   : > { %288 = vmatprep.mubr.bf16.mxu1 %v478_v0 }
  0x22   : > { %411 = vmatmul.mubr.msk.bf16.gmra.mrb[4].mxu1 %vm226_vm0, %v453_v7 }
  0xed   : > { %v280_v8 = vpop.f32.mrb[0].mxu1  ;;  %v270_v9 = vpop.f32.mrb[0].mxu0 }
  0xee   : > { %301 = vst [vmem:[%s181_s26 + $0x20] sm:$0xff] %v280_v8  ;;  %v282_v10 = vpop.f32.mrb[1].mxu1  ;;  %297 = vst [vmem:[%s181_s26] sm:$0xff] %v270_v9  ;;  %v272_v11 = vpop.f32.mrb[1].mxu0 }
  0xef   : > { %302 = vst [vmem:[%s181_s26 + $0x28] sm:$0xff] %v282_v10  ;;  %v284_v12 = vpop.f32.mrb[2].mxu1  ;;  %298 = vst [vmem:[%s181_s26 + $0x8] sm:$0xff] %v272_v11  ;;  %v274_v13 = vpop.f32.mrb[2].mxu0 }
  0xf0   : > { %303 = vst [vmem:[%s181_s26 + $0x30] sm:$0xff] %v284_v12  ;;  %v286_v14 = vpop.f32.mrb[3].mxu1  ;;  %299 = vst [vmem:[%s181_s26 + $0x10] sm:$0xff] %v274_v13  ;;  %v276_v15 = vpop.f32.mrb[3].mxu0 }
  0xf1   : > { %304 = vst [vmem:[%s181_s26 + $0x38] sm:$0xff] %v286_v14  ;;  %300 = vst [vmem:[%s181_s26 + $0x18] sm:$0xff] %v276_v15 }
  0xf5   : > { %v290_v16 = vpop.f32.mrb[4].mxu1 }
  0xf6   : > { %305 = vst [vmem:[%s181_s26 + $0x40] sm:$0x7f] %v290_v16  ;;  %v292_v17 = vpop.f32.mrb[5].mxu1 }
  0xf7   : > { %306 = vst [vmem:[%s181_s26 + $0x48] sm:$0x7f] %v292_v17  ;;  %v294_v18 = vpop.f32.mrb[6].mxu1 }
  0xf8   : > { %v295_v19 = vpop.f32.mrb[7].mxu1 }
  0xf9 PF: > { %s12_s11 = sadd.s32 1, %s476_s11   ;;  %s539_s9 = smov %s472_s10 }
  0xfa   : > { %p9_p5 = scmp.ge.s32.totalorder %s12_s11, 4   ;;  %s540_s10 = smov %s542_s12 }
  0xfc   :  { %11 = sbr.rel (!%p9_p5) target bundleno = 2 (0x2), region = 58 }

// kernel: os2d_forward.3
= control target key start
LH: loop header
LB: loop body
LE: loop exit
PB: predicated region body
PF: predicated region fallthrough
CT: control target
= control target key end

     0   :  { %s2260_s12 = smov 0   ;;  %s2535_s0 = inlined_call_operand.vmem [shape: bf16[2,3,326], index: 0, kind: input, shape index: {}]   ;;  %s2536_s1 = inlined_call_operand.vmem [shape: bf16[9,32,3], index: 1, kind: input, shape index: {}]   ;;  %s2537_s2 = inlined_call_operand.vmem [shape: f32[32,1], index: 2, kind: input, shape index: {}]   ;;  %s2538_s3 = inlined_call_operand.vmem [shape: bf16[2,32,288], index: 3, kind: output, shape index: {}]  }
   0x1 LB: > { %s1878_s13 = sadd.s32 4294967295, %s2227_s12   ;;  %p1882_p0 = scmp.ge.s32.totalorder %s2227_s12, 1  ;;  %s2227_s12 = sphi %s2260_s12, %s13_s12  }
   0x2   : > { %p137_p1 = scmp.lt.s32.totalorder %s2227_s12, 3 }
   0x4   : > { %p138_p2 = pnand %p1882_p0, %p137_p1 }
   0x5   : > { %p161_p3 = scmp.lt.s32.totalorder (!%p138_p2), %s1878_s13, 1  ;;  %v197_v0 = vlaneseq (!%p138_p2)  ;;  %v2229_v1 = vmov (!%p138_p2), 1983009808   ;;  %s2230_s18 = smov (!%p138_p2), 127   ;;  %v2232_v20 = vmov (!%p138_p2), 0   ;;  %vm225_vm0 = vcmask (!%p138_p2), 1040384  }
   0x6   : > { %141 = sbr.rel (%p138_p2) target bundleno = 532 (0x214), region = 32  ;;  %v195_v2 = vunpack.c.l.s4 (!%p138_p2), %v2229_v1  ;;  %s2231_s19 = smov (!%p138_p2), 126   ;;  %270 = vmatprep.mubr.bf16.mxu1 (!%p138_p2), %v2232_v20  ;;  %556 = vmatprep.mubr.bf16.mxu0 (!%p138_p2), %v2232_v20  ;;  %vm226_vm1 = vcmask (!%p138_p2), 1041408   ;;  %v2239_v49 = vmov (!%p138_p2), 65535   ;;  %vm215_vm2 = vcmask (!%p138_p2), 1039360   ;;  %v2197_v62 = vld [vmem:[%s2536_s1 + $0x10] sm:$0xff] (!%p138_p2)  }
   0x7   : > { %v198_v3 = vshrl.u32 (!%p138_p2), %v197_v0, 7  ;;  %2187 = vset.pattern.permute.xlu0 (!%p138_p2), %v2232_v20  ;;  %2188 = vset.pattern.permute.xlu1 (!%p138_p2), %v2232_v20  ;;  %s2233_s20 = smov (!%p138_p2), 110   ;;  %s2234_s21 = smov (!%p138_p2), 109   ;;  %v227_v50 = vsel (!%p138_p2), %vm225_vm0, 4294967295, %v2239_v49  ;;  %vm506_vm3 = vcmask (!%p138_p2), 1031168   ;;  %v1664_v63 = vld [vmem:[%s2537_s2] sm:$0xff] (!%p138_p2) }
   0x8   : > { %v196_v4 = vunpack.c.0.s8 (!%p138_p2), %v195_v2  ;;  %s2235_s22 = smov (!%p138_p2), 108   ;;  %s2236_s23 = smov (!%p138_p2), 92   ;;  %v2317_v52 = vsel (!%p138_p2), %vm226_vm1, %v227_v50, 0  ;;  %v1665_v0 = vld [vmem:[%s2537_s2 + $0x8] sm:$0xff] (!%p138_p2)  ;;  %vm218_vm4 = vcmask (!%p138_p2), 23552   ;;  %vm677_vm5 = vcmask (!%p138_p2), 900096  }
   0x9   : > { %s2237_s24 = smov (!%p138_p2), 91   ;;  %s2238_s25 = smov (!%p138_p2), 90   ;;  %vm848_vm6 = vcmask (!%p138_p2), 891904   ;;  %vm1019_vm7 = vcmask (!%p138_p2), 883712   ;;  %vm1190_vm8 = vcmask (!%p138_p2), 752640   ;;  %vm1361_vm9 = vcmask (!%p138_p2), 744448  }
   0xa   : > { %v2271_v5 = vsub.s32 (!%p138_p2), %v196_v4, %v198_v3  ;;  %vm1532_vm10 = vcmask (!%p138_p2), 736256   ;;  %vm1742_vm11 = vcmask (!%p138_p2), 261120   ;;  %vm1815_vm12 = vcmask (!%p138_p2), 257024  }
   0xd   : > { %s2540_s13 = smov (!%p161_p3, %s1878_s13), 1 }
   0xe   : > { %s2166_s14 = smul.u32 6, %s2540_s13 }
  0x10   : > { %s2276_s17 = scalar_lea.vmem %s2535_s0, %s2166_s14 }
  0x11   : > { %v172_v6 = vld [vmem:[%s2276_s17] sm:$0x3f] }
  0x12   : > { %v467_v7 = vld [vmem:[%s2276_s17] sm:$0x3f]  ;;  %v2281_v8 = vrot.slane %v172_v6, %v2271_v5  ;;  %v193_v9 = vcombine.high %v172_v6, %v172_v6 }
  0x13   : > { %v491_v10 = vrot.slane %v467_v7, %v2271_v5  ;;  %v638_v13 = vld [vmem:[%s2276_s17] sm:$0x3f]  ;;  %v484_v15 = vcombine.high %v467_v7, %v467_v7 }
  0x14   : > { %209 = vrot.lane.b32.xlu1 %v2281_v8, %s2230_s18  ;;  %v2287_v11 = vcombine.high %v2281_v8, %v2281_v8  ;;  %v2292_v14 = vrot.slane %v193_v9, %v2271_v5  ;;  %v655_v16 = vcombine.high %v638_v13, %v638_v13  ;;  %v809_v17 = vld [vmem:[%s2276_s17] sm:$0x3f]  ;;  %v662_v19 = vrot.slane %v638_v13, %v2271_v5  ;;  %v1666_v9 = vld [vmem:[%s2537_s2 + $0x10] sm:$0xff] }
  0x15   : > { %v499_v12 = vcombine.high %v491_v10, %v491_v10  ;;  %v498_v18 = vrot.slane %v484_v15, %v2271_v5  ;;  %v833_v22 = vrot.slane %v809_v17, %v2271_v5  ;;  %v826_v25 = vcombine.high %v809_v17, %v809_v17  ;;  %v980_v26 = vld [vmem:[%s2276_s17] sm:$0x3f]  ;;  %v2199_v15 = vld [vmem:[%s2536_s1 + $0x18] sm:$0xff]  }
  0x16   : > { %211 = vrot.lane.b32.xlu0 %v2287_v11, %s2230_s18  ;;  %v669_v21 = vrot.slane %v655_v16, %v2271_v5  ;;  %v670_v23 = vcombine.high %v662_v19, %v662_v19  ;;  %v997_v27 = vcombine.high %v980_v26, %v980_v26  ;;  %v1151_v28 = vld [vmem:[%s2276_s17] sm:$0x3f]  ;;  %v1004_v30 = vrot.slane %v980_v26, %v2271_v5 }
  0x17   : > { %v841_v24 = vcombine.high %v833_v22, %v833_v22  ;;  %v840_v29 = vrot.slane %v826_v25, %v2271_v5  ;;  %v1175_v32 = vrot.slane %v1151_v28, %v2271_v5  ;;  %v1168_v35 = vcombine.high %v1151_v28, %v1151_v28  ;;  %v1322_v36 = vld [vmem:[%s2276_s17] sm:$0x3f] }
  0x18   : > { %502 = vrot.lane.b32.xlu1 %v499_v12, %s2231_s19  ;;  %v1011_v31 = vrot.slane %v997_v27, %v2271_v5  ;;  %v1012_v33 = vcombine.high %v1004_v30, %v1004_v30  ;;  %v1339_v37 = vcombine.high %v1322_v36, %v1322_v36  ;;  %v1493_v38 = vld [vmem:[%s2276_s17] sm:$0x3f]  ;;  %v1346_v40 = vrot.slane %v1322_v36, %v2271_v5  ;;  %v2204_v36 = vld [vmem:[%s2536_s1 + $0x8] sm:$0xff]  }
  0x19   : > { %v1183_v34 = vcombine.high %v1175_v32, %v1175_v32  ;;  %v1182_v39 = vrot.slane %v1168_v35, %v2271_v5  ;;  %v1517_v42 = vrot.slane %v1493_v38, %v2271_v5  ;;  %v1510_v45 = vcombine.high %v1493_v38, %v1493_v38  ;;  %v2344_v6 = vld [vmem:[%s2536_s1 + $0x20] sm:$0xff]  }
  0x1a   : > { %213 = vrot.lane.b32.xlu0 %v2292_v14, %s2230_s18  ;;  %v1353_v41 = vrot.slane %v1339_v37, %v2271_v5  ;;  %v1354_v43 = vcombine.high %v1346_v40, %v1346_v40  ;;  %v360_v3 = vand.u32 %v2317_v52, %v2287_v11  ;;  %v357_v26 = vand.u32 %v2317_v52, %v2281_v8 }
  0x1b   : > { %v1525_v44 = vcombine.high %v1517_v42, %v1517_v42  ;;  %v1524_v46 = vrot.slane %v1510_v45, %v2271_v5  ;;  %v363_v27 = vand.u32 %v2317_v52, %v2292_v14  ;;  %v2206_v45 = vld [vmem:[%s2536_s1 + $0x48] sm:$0xff]  }
  0x1c   : > { %500 = vrot.lane.b32.xlu1 %v491_v10, %s2231_s19  ;;  %v1667_v10 = vld [vmem:[%s2537_s2 + $0x18] sm:$0xff] }
  0x1e   : > { %504 = vrot.lane.b32.xlu0 %v498_v18, %s2231_s19 }
  0x20   : > { %675 = vrot.lane.b32.xlu1 %v669_v21, %s2233_s20 }
  0x22   : > { %673 = vrot.lane.b32.xlu0 %v670_v23, %s2233_s20 }
  0x24   : > { %844 = vrot.lane.b32.xlu1 %v841_v24, %s2234_s21 }
  0x26   : > { %671 = vrot.lane.b32.xlu0 %v662_v19, %s2233_s20  ;;  %v2368_v19 = vld [vmem:[%s2536_s1 + $0x28] sm:$0xff]   ;;  %s2167_s20 = smul.u32 48, %s2540_s13 }
  0x28   : > { %842 = vrot.lane.b32.xlu1 %v833_v22, %s2234_s21  ;;  %s170_s13 = scalar_lea.vmem %s2538_s3, %s2167_s20 }
  0x2a   : > { %846 = vrot.lane.b32.xlu0 %v840_v29, %s2234_s21 }
  0x2c   : > { %1017 = vrot.lane.b32.xlu1 %v1011_v31, %s2235_s22  ;;  %v2201_v31 = vld [vmem:[%s2536_s1 + $0x30] sm:$0xff]  }
  0x2e   : > { %1015 = vrot.lane.b32.xlu0 %v1012_v33, %s2235_s22 }
  0x30   : > { %1186 = vrot.lane.b32.xlu1 %v1183_v34, %s2236_s23  ;;  %v2203_v34 = vld [vmem:[%s2536_s1 + $0x38] sm:$0xff]  }
  0x32   : > { %1013 = vrot.lane.b32.xlu0 %v1004_v30, %s2235_s22 }
  0x34   : > { %1184 = vrot.lane.b32.xlu1 %v1175_v32, %s2236_s23  ;;  %v2202_v32 = vld [vmem:[%s2536_s1] sm:$0xff]  }
  0x36   : > { %1188 = vrot.lane.b32.xlu0 %v1182_v39, %s2236_s23 }
  0x38   : > { %1359 = vrot.lane.b32.xlu1 %v1353_v41, %s2237_s24  ;;  %v2205_v41 = vld [vmem:[%s2536_s1 + $0x40] sm:$0xff]  }
  0x3a   : > { %1357 = vrot.lane.b32.xlu0 %v1354_v43, %s2237_s24 }
  0x3c   : > { %1528 = vrot.lane.b32.xlu1 %v1525_v44, %s2238_s25 }
  0x3e   : > { %1355 = vrot.lane.b32.xlu0 %v1346_v40, %s2237_s24 }
  0x40   : > { %1526 = vrot.lane.b32.xlu1 %v1517_v42, %s2238_s25 }
  0x42   : > { %1530 = vrot.lane.b32.xlu0 %v1524_v46, %s2238_s25 }
  0x44   : > { %1675 = vperm.xlu1 %2188, %v1665_v0  }
  0x46   : > { %1670 = vperm.xlu0 %2187, %v1664_v63   ;;  %v2209_v63 = vld [vmem:[%s2536_s1 + $0x60] sm:$0xff]  }
  0x48   : > { %1680 = vperm.xlu1 %2188, %v1666_v9  }
  0x4a   : > { %1685 = vperm.xlu0 %2187, %v1667_v10   ;;  %v2212_v10 = vld [vmem:[%s2536_s1 + $0x78] sm:$0xff]  }
  0x86   : > { %v210_v47 = vpop.permute.xlu1 %209 }
  0x88   : > { %v212_v48 = vpop.permute.xlu0 %211 }
  0x89   : > { %v216_v53 = vsel %vm215_vm2, %v210_v47, %v212_v48 }
  0x8a   : > { %v503_v51 = vpop.permute.xlu1 %502  ;;  %v230_v59 = vand.u32 %v2317_v52, %v216_v53 }
  0x8c   : > { %v214_v54 = vpop.permute.xlu0 %213 }
  0x8d   : > { %v217_v55 = vsel %vm215_vm2, %v212_v48, %v214_v54  ;;  %v236_v60 = vand.u32 %v2317_v52, %v214_v54  ;;  %v2207_v48 = vld [vmem:[%s2536_s1 + $0x50] sm:$0xff]  }
  0x8e   : > { %v233_v56 = vand.u32 %v2317_v52, %v217_v55  ;;  %v501_v57 = vpop.permute.xlu1 %500 }
  0x8f   : > { %v507_v58 = vsel %vm506_vm3, %v501_v57, %v503_v51 }
  0x90   : > { %238 = vmatprep.subr.bf16.mxu1 %v233_v56  ;;  %v2322_v61 = vpop.permute.xlu0 %504  ;;  %v516_v2 = vand.u32 %v507_v58, %v2317_v52  ;;  %v2208_v56 = vld [vmem:[%s2536_s1 + $0x58] sm:$0xff]  }
  0x91   : > { %239 = vmatpush1.bf16.msra.mxu1 %v230_v59  ;;  %v508_v1 = vsel %vm506_vm3, %v503_v51, %v2322_v61  ;;  %v522_v33 = vand.u32 %v2322_v61, %v2317_v52 }
  0x92   : > { %2016 = vmatprep.subr.bf16.mxu1 %v236_v60  ;;  %v519_v4 = vand.u32 %v508_v1, %v2317_v52  ;;  %v2338_v5 = vpop.permute.xlu1 %675 }
  0x93   : > { %v693_v44 = vand.u32 %v2338_v5, %v2317_v52 }
  0x94   : > { %1891 = vmatmul.mubr.msk.bf16.vlgmr.msra.gmra.mrb[0].mxu1 %vm218_vm4, %v2197_v62  ;;  %524 = vmatprep.subr.bf16.mxu0 %v519_v4  ;;  %v674_v7 = vpop.permute.xlu0 %673 }
  0x95   : > { %2017 = vmatpush3.bf16.msra.mxu1 %v236_v60  ;;  %525 = vmatpush1.bf16.msra.mxu0 %v516_v2  ;;  %v679_v11 = vsel %vm677_vm5, %v674_v7, %v2338_v5  ;;  %v2210_v2 = vld [vmem:[%s2536_s1 + $0x68] sm:$0xff]  }
  0x96   : > { %280 = vmatprep.mubr.bf16.mxu1 %v2232_v20  ;;  %v690_v12 = vand.u32 %v679_v11, %v2317_v52  ;;  %365 = vmatprep.subr.bf16.mxu1 %v360_v3  ;;  %v845_v13 = vpop.permute.xlu1 %844  ;;  %v2213_v11 = vld [vmem:[%s2536_s1 + $0x80] sm:$0xff]  }
  0x98   : > { %1907 = vmatmul.mubr.msk.bf16.vlgmr.msra.gmra.mrb[0].mxu0 %vm218_vm4, %v2344_v6  ;;  %v672_v16 = vpop.permute.xlu0 %671  ;;  %695 = vmatprep.subr.bf16.mxu0 %v690_v12 }
  0x99   : > { %566 = vmatprep.mubr.bf16.mxu0 %v2232_v20  ;;  %v678_v17 = vsel %vm677_vm5, %v672_v16, %v674_v7 }
  0x9a   : > { %v687_v18 = vand.u32 %v678_v17, %v2317_v52  ;;  %v843_v22 = vpop.permute.xlu1 %842 }
  0x9b   : > { %v849_v28 = vsel %vm848_vm6, %v843_v22, %v845_v13 }
  0x9c   : > { %1892 = vmatmul.mubr.msk.bf16.gmra.mrb[4].mxu1 %vm218_vm4, %v2199_v15  ;;  %696 = vmatpush1.bf16.msra.mxu0 %v687_v18  ;;  %v2370_v21 = vpop.permute.xlu0 %846  ;;  %v858_v8 = vand.u32 %v849_v28, %v2317_v52 }
  0x9d   : > { %2018 = vmatprep.mubr.msk.bf16.mxu1 %vm218_vm4, %v2197_v62  ;;  %v850_v23 = vsel %vm848_vm6, %v845_v13, %v2370_v21  ;;  %v864_v54 = vand.u32 %v2370_v21, %v2317_v52  ;;  %v2214_v13 = vld [vmem:[%s2536_s1 + $0x88] sm:$0xff]  }
  0x9e   : > { %v861_v24 = vand.u32 %v850_v23, %v2317_v52  ;;  %v2378_v25 = vpop.permute.xlu1 %1017 }
  0x9f   : > { %v1035_v59 = vand.u32 %v2378_v25, %v2317_v52 }
  0xa0   : > { %1908 = vmatmul.mubr.msk.bf16.gmra.mrb[4].mxu0 %vm218_vm4, %v2368_v19  ;;  %866 = vmatprep.subr.bf16.mxu0 %v861_v24  ;;  %v1016_v29 = vpop.permute.xlu0 %1015 }
  0xa1   : > { %727 = vmatprep.mubr.bf16.mxu0 %v2232_v20  ;;  %v1021_v30 = vsel %vm1019_vm7, %v1016_v29, %v2378_v25 }
  0xa2   : > { %v1032_v14 = vand.u32 %v1021_v30, %v2317_v52  ;;  %v1187_v39 = vpop.permute.xlu1 %1186 }
  0xa4   : > { %2019 = vmatmul.mubr.msk.bf16.vlgmr.msra.gmra.mrb[8].mxu1 %vm218_vm4, %v2199_v15  ;;  %v1014_v35 = vpop.permute.xlu0 %1013 }
  0xa5   : > { %366 = vmatpush1.bf16.msra.mxu1 %v357_v26  ;;  %397 = vmatprep.mubr.bf16.mxu1 %v2232_v20  ;;  %v1020_v38 = vsel %vm1019_vm7, %v1014_v35, %v1016_v29 }
  0xa6   : > { %2022 = vmatprep.subr.bf16.mxu1 %v363_v27  ;;  %v1029_v42 = vand.u32 %v1020_v38, %v2317_v52  ;;  %v1185_v46 = vpop.permute.xlu1 %1184 }
  0xa7   : > { %v1191_v49 = vsel %vm1190_vm8, %v1185_v46, %v1187_v39 }
  0xa8   : > { %1917 = vmatmul.mubr.msk.bf16.vlgmr.msra.gmra.mrb[0].mxu0 %vm218_vm4, %v2201_v31  ;;  %v1189_v37 = vpop.permute.xlu0 %1188  ;;  %v1200_v53 = vand.u32 %v1191_v49, %v2317_v52 }
  0xa9   : > { %737 = vmatprep.mubr.bf16.mxu0 %v2232_v20  ;;  %867 = vmatpush1.bf16.msra.mxu0 %v858_v8  ;;  %v1192_v40 = vsel %vm1190_vm8, %v1187_v39, %v1189_v37  ;;  %v1206_v3 = vand.u32 %v1189_v37, %v2317_v52 }
  0xaa   : > { %1037 = vmatprep.subr.bf16.mxu0 %v1032_v14  ;;  %v1203_v43 = vand.u32 %v1192_v40, %v2317_v52  ;;  %v1360_v47 = vpop.permute.xlu1 %1359 }
  0xab   : > { %v1377_v9 = vand.u32 %v1360_v47, %v2317_v52 }
  0xac   : > { %1897 = vmatmul.mubr.msk.bf16.vlgmr.msra.gmra.mrb[0].mxu1 %vm218_vm4, %v2202_v32  ;;  %v1358_v50 = vpop.permute.xlu0 %1357 }
  0xad   : > { %2023 = vmatpush3.bf16.msra.mxu1 %v363_v27  ;;  %407 = vmatprep.mubr.bf16.mxu1 %v2232_v20  ;;  %v1363_v51 = vsel %vm1361_vm9, %v1358_v50, %v1360_v47 }
  0xae   : > { %2028 = vmatprep.subr.bf16.mxu1 %v522_v33  ;;  %v1374_v55 = vand.u32 %v1363_v51, %v2317_v52  ;;  %v1529_v61 = vpop.permute.xlu1 %1528 }
  0xb0   : > { %1918 = vmatmul.mubr.msk.bf16.gmra.mrb[4].mxu0 %vm218_vm4, %v2203_v34  ;;  %v1356_v57 = vpop.permute.xlu0 %1355 }
  0xb1   : > { %898 = vmatprep.mubr.bf16.mxu0 %v2232_v20  ;;  %v1362_v60 = vsel %vm1361_vm9, %v1356_v57, %v1358_v50 }
  0xb2   : > { %v1371_v0 = vand.u32 %v1362_v60, %v2317_v52  ;;  %v1527_v4 = vpop.permute.xlu1 %1526 }
  0xb3   : > { %v1533_v5 = vsel %vm1532_vm10, %v1527_v4, %v1529_v61 }
  0xb4   : > { %1898 = vmatmul.mubr.msk.bf16.gmra.mrb[4].mxu1 %vm218_vm4, %v2204_v36  ;;  %v1531_v58 = vpop.permute.xlu0 %1530  ;;  %v1542_v7 = vand.u32 %v1533_v5, %v2317_v52 }
  0xb5   : > { %2024 = vmatprep.mubr.msk.bf16.mxu1 %vm218_vm4, %v2202_v32  ;;  %v1534_v62 = vsel %vm1532_vm10, %v1529_v61, %v1531_v58  ;;  %v1548_v12 = vand.u32 %v1531_v58, %v2317_v52 }
  0xb6   : > { %v1545_v1 = vand.u32 %v1534_v62, %v2317_v52 }
  0xb8   : > { %1927 = vmatmul.mubr.msk.bf16.vlgmr.msra.gmra.mrb[0].mxu0 %vm218_vm4, %v2205_v41 }
  0xb9   : > { %908 = vmatprep.mubr.bf16.mxu0 %v2232_v20  ;;  %1038 = vmatpush1.bf16.msra.mxu0 %v1029_v42 }
  0xba   : > { %1208 = vmatprep.subr.bf16.mxu0 %v1203_v43 }
  0xbc   : > { %2025 = vmatmul.mubr.msk.bf16.vlgmr.msra.gmra.mrb[8].mxu1 %vm218_vm4, %v2204_v36 }
  0xbd   : > { %2029 = vmatpush3.bf16.msra.mxu1 %v522_v33  ;;  %2030 = vmatprep.mubr.msk.bf16.mxu1 %vm218_vm4, %v2344_v6  ;;  %v2211_v6 = vld [vmem:[%s2536_s1 + $0x70] sm:$0xff]  }
  0xbe   : > { %2034 = vmatprep.subr.bf16.mxu1 %v693_v44 }
  0xc0   : > { %1928 = vmatmul.mubr.msk.bf16.gmra.mrb[4].mxu0 %vm218_vm4, %v2206_v45 }
  0xc1   : > { %1069 = vmatprep.mubr.bf16.mxu0 %v2232_v20 }
  0xc3   : > { %v1676_v28 = vpop.permute.xlu1 %1675 }
  0xc5   : > { %v1671_v23 = vpop.permute.xlu0 %1670 }
  0xc7   : > { %v1681_v39 = vpop.permute.xlu1 %1680 }
  0xc8   : > { %2031 = vmatmul.mubr.msk.bf16.vlgmr.msra.gmra.mrb[8].mxu1 %vm218_vm4, %v2368_v19  ;;  %1937 = vmatmul.mubr.msk.bf16.vlgmr.msra.gmra.mrb[0].mxu0 %vm218_vm4, %v2207_v48 }
  0xc9   : > { %2035 = vmatpush3.bf16.msra.mxu1 %v693_v44  ;;  %1079 = vmatprep.mubr.bf16.mxu0 %v2232_v20 }
  0xca   : > { %2040 = vmatprep.subr.bf16.mxu1 %v864_v54  ;;  %2036 = vmatprep.mubr.msk.bf16.mxu1 %vm218_vm4, %v2201_v31 }
  0xcb   : > { %1209 = vmatpush1.bf16.msra.mxu0 %v1200_v53 }
  0xcc   : > { %1379 = vmatprep.subr.bf16.mxu0 %v1374_v55 }
  0xd0   : > { %1938 = vmatmul.mubr.msk.bf16.gmra.mrb[4].mxu0 %vm218_vm4, %v2208_v56 }
  0xd1   : > { %1240 = vmatprep.mubr.bf16.mxu0 %v2232_v20 }
  0xd4   : > { %2037 = vmatmul.mubr.msk.bf16.vlgmr.msra.gmra.mrb[8].mxu1 %vm218_vm4, %v2203_v34 }
  0xd5   : > { %2041 = vmatpush3.bf16.msra.mxu1 %v864_v54  ;;  %2042 = vmatprep.mubr.msk.bf16.mxu1 %vm218_vm4, %v2205_v41 }
  0xd6   : > { %2046 = vmatprep.subr.bf16.mxu1 %v1035_v59 }
  0xd8   : > { %1947 = vmatmul.mubr.msk.bf16.vlgmr.msra.gmra.mrb[0].mxu0 %vm218_vm4, %v2209_v63 }
  0xd9   : > { %1250 = vmatprep.mubr.bf16.mxu0 %v2232_v20  ;;  %1380 = vmatpush1.bf16.msra.mxu0 %v1371_v0 }
  0xda   : > { %1550 = vmatprep.subr.bf16.mxu0 %v1545_v1 }
  0xe0   : > { %2043 = vmatmul.mubr.msk.bf16.vlgmr.msra.gmra.mrb[8].mxu1 %vm218_vm4, %v2206_v45  ;;  %1948 = vmatmul.mubr.msk.bf16.gmra.mrb[4].mxu0 %vm218_vm4, %v2210_v2 }
  0xe1   : > { %2047 = vmatpush3.bf16.msra.mxu1 %v1035_v59  ;;  %1411 = vmatprep.mubr.bf16.mxu0 %v2232_v20 }
  0xe2   : > { %2052 = vmatprep.subr.bf16.mxu1 %v1206_v3  ;;  %2048 = vmatprep.mubr.msk.bf16.mxu1 %vm218_vm4, %v2207_v48  ;;  %v1686_v48 = vpop.permute.xlu0 %1685 }
  0xe8   : > { %1957 = vmatmul.mubr.msk.bf16.vlgmr.msra.gmra.mrb[0].mxu0 %vm218_vm4, %v2211_v6 }
  0xe9   : > { %1421 = vmatprep.mubr.bf16.mxu0 %v2232_v20  ;;  %1551 = vmatpush1.bf16.msra.mxu0 %v1542_v7 }
  0xec   : > { %2049 = vmatmul.mubr.msk.bf16.vlgmr.msra.gmra.mrb[8].mxu1 %vm218_vm4, %v2208_v56 }
  0xed   : > { %2053 = vmatpush3.bf16.msra.mxu1 %v1206_v3  ;;  %2054 = vmatprep.mubr.msk.bf16.mxu1 %vm218_vm4, %v2209_v63 }
  0xee   : > { %2058 = vmatprep.subr.bf16.mxu1 %v1377_v9 }
  0xf0   : > { %1958 = vmatmul.mubr.msk.bf16.gmra.mrb[4].mxu0 %vm218_vm4, %v2212_v10 }
  0xf1   : > { %1582 = vmatprep.mubr.bf16.mxu0 %v2232_v20 }
  0xf8   : > { %2055 = vmatmul.mubr.msk.bf16.vlgmr.msra.gmra.mrb[8].mxu1 %vm218_vm4, %v2210_v2  ;;  %1967 = vmatmul.mubr.msk.bf16.vlgmr.msra.gmra.mrb[0].mxu0 %vm218_vm4, %v2213_v11 }
  0xf9   : > { %2059 = vmatpush3.bf16.msra.mxu1 %v1377_v9  ;;  %1592 = vmatprep.mubr.bf16.mxu0 %v2232_v20 }
  0xfa   : > { %2064 = vmatprep.subr.bf16.mxu1 %v1548_v12  ;;  %2060 = vmatprep.mubr.msk.bf16.mxu1 %vm218_vm4, %v2211_v6 }
 0x100   : > { %1968 = vmatmul.mubr.msk.bf16.gmra.mrb[4].mxu0 %vm218_vm4, %v2214_v13 }
 0x104   : > { %2061 = vmatmul.mubr.msk.bf16.vlgmr.msra.gmra.mrb[8].mxu1 %vm218_vm4, %v2212_v10 }
 0x105   : > { %2065 = vmatpush3.bf16.msra.mxu1 %v1548_v12  ;;  %2066 = vmatprep.mubr.msk.bf16.mxu1 %vm218_vm4, %v2213_v11 }
 0x110   : > { %2067 = vmatmul.mubr.msk.bf16.vlgmr.msra.gmra.mrb[8].mxu1 %vm218_vm4, %v2214_v13 }
 0x17f   : > { %v399_v52 = vpop.f32.mrb[0].mxu1 }
 0x180   : > { %v401_v15 = vpop.f32.mrb[1].mxu1 }
 0x181   : > { %v403_v16 = vpop.f32.mrb[2].mxu1 }
 0x182   : > { %v405_v20 = vpop.f32.mrb[3].mxu1 }
 0x187   : > { %v409_v17 = vpop.f32.mrb[4].mxu1 }
 0x188   : > { %v411_v18 = vpop.f32.mrb[5].mxu1 }
 0x189   : > { %v413_v19 = vpop.f32.mrb[6].mxu1 }
 0x18a   : > { %v415_v21 = vpop.f32.mrb[7].mxu1 }
 0x1cb   : > { %v1584_v22 = vpop.f32.mrb[0].mxu0 }
 0x1cc   : > { %v2070_v24 = vadd.f32 %v1584_v22, %v399_v52  ;;  %v1586_v25 = vpop.f32.mrb[1].mxu0 }
 0x1cd   : > { %v2071_v26 = vadd.f32 %v1586_v25, %v401_v15  ;;  %v1588_v27 = vpop.f32.mrb[2].mxu0 }
 0x1ce   : > { %v2072_v29 = vadd.f32 %v1588_v27, %v403_v16  ;;  %v1688_v30 = vadd.f32 %v2070_v24, %v1671_v23  ;;  %v1590_v31 = vpop.f32.mrb[3].mxu0 }
 0x1cf   : > { %v1689_v8 = vadd.f32 %v2071_v26, %v1671_v23  ;;  %v2073_v14 = vadd.f32 %v1590_v31, %v405_v20 }
 0x1d0   : > { %v2503_v32 = vmax.f32 %v1688_v30, 0.0  ;;  %v1691_v33 = vadd.f32 %v2072_v29, %v1676_v28 }
 0x1d1   : > { %v2505_v34 = vmax.f32 %v1689_v8, 0.0  ;;  %v1692_v35 = vadd.f32 %v2073_v14, %v1676_v28 }
 0x1d2   : > { %v2507_v36 = vmax.f32 %v1691_v33, 0.0  ;;  %v1712_v40 = vmul.f32 %v2503_v32, %v2503_v32 }
 0x1d3   : > { %v2509_v37 = vmax.f32 %v1692_v35, 0.0  ;;  %v1594_v38 = vpop.f32.mrb[4].mxu0  ;;  %v1713_v44 = vmul.f32 %v2505_v34, %v2505_v34 }
 0x1d4   : > { %v1715_v41 = vmul.f32 %v2507_v36, %v2507_v36  ;;  %v2074_v42 = vadd.f32 %v1594_v38, %v409_v17  ;;  %v1596_v43 = vpop.f32.mrb[5].mxu0 }
 0x1d5   : > { %v1716_v45 = vmul.f32 %v2509_v37, %v2509_v37  ;;  %v2075_v46 = vadd.f32 %v1596_v43, %v411_v18  ;;  %v1598_v47 = vpop.f32.mrb[6].mxu0 }
 0x1d6   : > { %v1724_v49 = vadd.f32 %v1715_v41, %v1712_v40  ;;  %v1694_v50 = vadd.f32 %v2074_v42, %v1681_v39  ;;  %v2076_v51 = vadd.f32 %v1598_v47, %v413_v19  ;;  %v1600_v53 = vpop.f32.mrb[7].mxu0 }
 0x1d7   : > { %v1733_v54 = vadd.f32 %v1716_v45, %v1713_v44  ;;  %v1695_v55 = vadd.f32 %v2075_v46, %v1681_v39  ;;  %v2077_v56 = vadd.f32 %v1600_v53, %v415_v21 }
 0x1d8   : > { %v1706_v57 = vmax.f32 %v1694_v50, 0.0  ;;  %v1697_v58 = vadd.f32 %v2076_v51, %v1686_v48 }
 0x1d9   : > { %v2519_v59 = vmax.f32 %v1695_v55, 0.0  ;;  %v1698_v60 = vadd.f32 %v2077_v56, %v1686_v48 }
 0x1da   : > { %v1718_v61 = vmul.f32 %v1706_v57, %v1706_v57  ;;  %v1709_v62 = vmax.f32 %v1697_v58, 0.0 }
 0x1db   : > { %v1719_v63 = vmul.f32 %v2519_v59, %v2519_v59  ;;  %v1710_v0 = vmax.f32 %v1698_v60, 0.0 }
 0x1dc   : > { %v1725_v1 = vadd.f32 %v1724_v49, %v1718_v61  ;;  %v1721_v2 = vmul.f32 %v1709_v62, %v1709_v62 }
 0x1dd   : > { %v1734_v3 = vadd.f32 %v1733_v54, %v1719_v63  ;;  %v1722_v4 = vmul.f32 %v1710_v0, %v1710_v0 }
 0x1de   : > { %v1726_v5 = vadd.f32 %v1725_v1, %v1721_v2 }
 0x1df   : > { %v1735_v6 = vadd.f32 %v1734_v3, %v1722_v4 }
 0x1e0   : > { %v1727_v7 = vrot.slane %v1726_v5, 4 }
 0x1e1   : > { %v1736_v9 = vrot.slane %v1735_v6, 4 }
 0x1e2   : > { %v1728_v10 = vadd.f32 %v1727_v7, %v1726_v5 }
 0x1e3   : > { %v1737_v11 = vadd.f32 %v1736_v9, %v1735_v6  ;;  %v2068_v12 = vpop.f32.mrb[8].mxu1 }
 0x1e4   : > { %v1729_v13 = vrot.slane %v1728_v10, 2  ;;  %v1696_v52 = vadd.f32 %v2068_v12, %v1681_v39  ;;  %v1637_v15 = vpop.f32.mrb[9].mxu1 }
 0x1e5   : > { %v1738_v16 = vrot.slane %v1737_v11, 2  ;;  %v1690_v20 = vadd.f32 %v1671_v23, %v1637_v15  ;;  %v2069_v17 = vpop.f32.mrb[10].mxu1 }
 0x1e6   : > { %v1730_v18 = vadd.f32 %v1729_v13, %v1728_v10  ;;  %v1699_v19 = vadd.f32 %v2069_v17, %v1686_v48  ;;  %v1640_v21 = vpop.f32.mrb[11].mxu1  ;;  %v1708_v24 = vmax.f32 %v1696_v52, 0.0 }
 0x1e7   : > { %v1739_v22 = vadd.f32 %v1738_v16, %v1737_v11  ;;  %v1702_v25 = vmax.f32 %v1690_v20, 0.0  ;;  %v1693_v26 = vadd.f32 %v1676_v28, %v1640_v21 }
 0x1e8   : > { %v1731_v27 = vrot.slane %v1730_v18, 1  ;;  %v1711_v31 = vmax.f32 %v1699_v19, 0.0  ;;  %v1720_v35 = vmul.f32 %v1708_v24, %v1708_v24 }
 0x1e9   : > { %v1740_v29 = vrot.slane %v1739_v22, 1  ;;  %v1714_v30 = vmul.f32 %v1702_v25, %v1702_v25  ;;  %v1705_v8 = vmax.f32 %v1693_v26, 0.0 }
 0x1ea   : > { %v1732_v14 = vadd.f32 %v1731_v27, %v1730_v18  ;;  %v1723_v41 = vmul.f32 %v1711_v31, %v1711_v31  ;;  %v1746_v28 = vsel %vm1742_vm11, %v1720_v35, 0.0 }
 0x1eb   : > { %v1741_v33 = vadd.f32 %v1740_v29, %v1739_v22  ;;  %v1717_v38 = vmul.f32 %v1705_v8, %v1705_v8  ;;  %v1743_v40 = vsel %vm1742_vm11, %v1714_v30, 0.0 }
 0x1ec   : > { %v1756_v23 = vadd.f32 1e-12, %v1732_v14  ;;  %v1748_v45 = vsel %vm1742_vm11, %v1723_v41, 0.0 }
 0x1ed   : > { %v1757_v39 = vadd.f32 1e-12, %v1741_v33  ;;  %v1744_v42 = vsel %vm1742_vm11, %v1717_v38, 0.0 }
 0x1ee   : > { %2215 = vrsqrt.f32 %v1756_v23  ;;  %v1745_v43 = vadd.f32 %v1744_v42, %v1743_v40 }
 0x1ef   : > { %2217 = vrsqrt.f32 %v1757_v39 }
 0x1f0   : > { %v1747_v44 = vadd.f32 %v1746_v28, %v1745_v43 }
 0x1f2   : > { %v1749_v46 = vadd.f32 %v1748_v45, %v1747_v44 }
 0x1f4   : > { %v1750_v47 = vrot.slane %v1749_v46, 4 }
 0x1f6   : > { %v1751_v48 = vadd.f32 %v1750_v47, %v1749_v46 }
 0x1f8   : > { %v2216_v49 = vpop.eup %2215  ;;  %v1752_v50 = vrot.slane %v1751_v48, 2 }
 0x1f9   : > { %v2218_v51 = vpop.eup %2217  ;;  %v1762_v53 = vmul.f32 %v2216_v49, %v2503_v32  ;;  %v1765_v54 = vmul.f32 %v2216_v49, %v2507_v36  ;;  %v1768_v55 = vmul.f32 %v2216_v49, %v1706_v57  ;;  %v1771_v56 = vmul.f32 %v2216_v49, %v1709_v62 }
 0x1fa   : > { %v1763_v58 = vmul.f32 %v2218_v51, %v2505_v34  ;;  %v1766_v60 = vmul.f32 %v2218_v51, %v2509_v37  ;;  %v1769_v61 = vmul.f32 %v2218_v51, %v2519_v59  ;;  %v1772_v63 = vmul.f32 %v2218_v51, %v1710_v0 }
 0x1fb   : > { %v1753_v1 = vadd.f32 %v1752_v50, %v1751_v48 }
 0x1fc   : > { %v1981_v2 = vpack.c.bf16 %v1763_v58, %v1762_v53  ;;  %v1983_v3 = vpack.c.bf16 %v1766_v60, %v1765_v54  ;;  %v1985_v4 = vpack.c.bf16 %v1769_v61, %v1768_v55  ;;  %v1987_v32 = vpack.c.bf16 %v1772_v63, %v1771_v56 }
 0x1fd   : > { %v1754_v5 = vrot.slane %v1753_v1, 1 }
 0x1fe   : > { %1814 = vst [vmem:[%s170_s13] sm:$0xff] %v1981_v2  ;;  %1817 = vst [vmem:[%s170_s13 + $0xc] sm:$0xff] %v1983_v3 }
 0x1ff   : > { %1819 = vst [vmem:[%s170_s13 + $0x18] sm:$0xff] %v1985_v4  ;;  %1821 = vst [vmem:[%s170_s13 + $0x24] sm:$0xff] %v1987_v32  ;;  %v1755_v34 = vadd.f32 %v1754_v5, %v1753_v1 }
 0x201   : > { %v1758_v36 = vadd.f32 1e-12, %v1755_v34 }
 0x203   : > { %2219 = vrsqrt.f32 %v1758_v36 }
 0x20d   : > { %v2220_v37 = vpop.eup %2219 }
 0x20e   : > { %v1764_v57 = vmul.f32 %v2220_v37, %v1702_v25  ;;  %v1767_v59 = vmul.f32 %v2220_v37, %v1705_v8  ;;  %v1770_v62 = vmul.f32 %v2220_v37, %v1708_v24  ;;  %v1773_v0 = vmul.f32 %v2220_v37, %v1711_v31 }
 0x210   : > { %v1982_v6 = vpack.c.bf16 %v1764_v57, %v1764_v57  ;;  %v1984_v7 = vpack.c.bf16 %v1767_v59, %v1767_v59  ;;  %v1986_v9 = vpack.c.bf16 %v1770_v62, %v1770_v62  ;;  %v1988_v10 = vpack.c.bf16 %v1773_v0, %v1773_v0 }
 0x212   : > { %1816 = vst.msk [vmem:[%s170_s13 + $0x8] sm:$0xf] %vm1815_vm12, %v1982_v6  ;;  %1818 = vst.msk [vmem:[%s170_s13 + $0x14] sm:$0xf] %vm1815_vm12, %v1984_v7 }
 0x213   : > { %1820 = vst.msk [vmem:[%s170_s13 + $0x20] sm:$0xf] %vm1815_vm12, %v1986_v9  ;;  %1822 = vst.msk [vmem:[%s170_s13 + $0x2c] sm:$0xf] %vm1815_vm12, %v1988_v10 }
 0x214 PF: > { %s13_s12 = sadd.s32 1, %s2227_s12  }
 0x215   : > { %p10_p4 = scmp.ge.s32.totalorder %s13_s12, 4  }
 0x217   :  { %12 = sbr.rel (!%p10_p4) target bundleno = 1 (0x1), region = 70 }

</bundles_post_ra>
